<compile_context>
chip_gen: v7x
topology: tpu7x:2x2x1
jax: 0.10.0
libtpu: 0.0.40
codegen_flags: <defaults>
</compile_context>

<pallas_src>
import jax
import jax.numpy as jnp
from jax.experimental import pallas as pl
from jax.experimental.pallas import tpu as pltpu


# ---------------------------------------------------------------------------
# Kernel 1: conv (single fused matmul over 4 pool offsets) + 4-way pool max
#           + bias + ReLU, channel-major lane-dense output
# ---------------------------------------------------------------------------
def conv_relu_pool_kernel(v_ref, w_ref, b_ref, o_ref):
    # v_ref : (1, Cin*16, TP) bf16  pool-phase taps (lane = pooled spatial)
    # w_ref : (4*Cout, Cin*16) bf16 zero-extended conv weight, rows (si,sj,o)
    # b_ref : (Cout, 1)        f32
    # o_ref : (1, Cout, TP)    bf16 channel-major pooled output (lane-dense)
    y = jnp.dot(w_ref[...], v_ref[0], preferred_element_type=jnp.float32)
    c = y.shape[0] // 4
    # max over the 4 pool offsets (sublane-aligned static slices, VPU max).
    m = jnp.maximum(jnp.maximum(y[:c], y[c:2 * c]),
                    jnp.maximum(y[2 * c:3 * c], y[3 * c:]))
    # max_s relu(y_s + b) == relu(max_s y_s + b): shared bias, monotone relu.
    o_ref[0] = jnp.maximum(m + b_ref[...], 0.0).astype(o_ref.dtype)


# ---------------------------------------------------------------------------
# Kernel 2: fc1 (reduction-tiled, f32 accumulator, hidden split across the
#           parallel grid axis) -> ReLU -> fc2 partial
# ---------------------------------------------------------------------------
def mlp_kernel(x_ref, w1_ref, b1_ref, w2_ref, o_ref, h_acc):
    # x_ref: (N, TF) bf16, w1_ref: (TF, HS) bf16, b1: (1, HS) f32,
    # w2_ref: (HS, C) bf16, o_ref: (1, N, C) f32, h_acc: (N, HS) f32
    k = pl.program_id(1)

    @pl.when(k == 0)
    def _():
        h_acc[...] = jnp.zeros_like(h_acc)

    h_acc[...] += jnp.dot(x_ref[...], w1_ref[...],
                          preferred_element_type=jnp.float32)

    @pl.when(k == pl.num_programs(1) - 1)
    def _():
        h = jnp.maximum(h_acc[...] + b1_ref[...], 0.0).astype(w2_ref.dtype)
        o_ref[0] = jnp.dot(h, w2_ref[...],
                           preferred_element_type=jnp.float32).astype(o_ref.dtype)


# ---------------------------------------------------------------------------
# One-time parameter preprocessing (model-load time, NOT inside the forward)
# ---------------------------------------------------------------------------
def prepare_params(params):
    wc, bc, w1, b1, w2, b2 = params            # PyTorch-native layouts
    Cout, Cin = wc.shape[0], wc.shape[1]
    hidden = w1.shape[0]
    num_classes = w2.shape[0]

    # Zero-extended conv weight over the 4x4 pool-phase grid:
    #   w_ext[si, sj, o, cin, a, b] = wc[o, cin, a-si, b-sj] (0 outside 0..2).
    w_ext = jnp.zeros((2, 2, Cout, Cin, 4, 4), jnp.float32)
    for si in range(2):
        for sj in range(2):
            w_ext = w_ext.at[si, sj, :, :, si:si + 3, sj:sj + 3].set(wc)
    w_all = w_ext.reshape(4 * Cout, Cin * 16).astype(jnp.bfloat16)

    b_c = bc.reshape(Cout, 1).astype(jnp.float32)
    w1_t = w1.T.astype(jnp.bfloat16)           # (F, hidden)
    b1_r = b1.reshape(1, hidden).astype(jnp.float32)
    w2_t = w2.T.astype(jnp.bfloat16)           # (hidden, C)
    b2_r = b2.reshape(1, num_classes).astype(jnp.float32)
    return (w_all, b_c, w1_t, b1_r, w2_t, b2_r)


# ---------------------------------------------------------------------------
# Tile pickers
# ---------------------------------------------------------------------------
def _pick_spatial_tile(P):
    for c in (4096, 2048, 1024, 512, 256, 128):
        if P % c == 0:
            return c
    return P


def _pick_reduction_tile(F):
    for c in (8192, 4096, 2048, 1024, 512, 256, 128):
        if F % c == 0:
            return c
    return F


# ---------------------------------------------------------------------------
# Forward pass (layout glue in JAX, compute in Pallas)
# ---------------------------------------------------------------------------
def galaxy_cnn_forward(x_nchw, prepped):
    w_all, b_c, w1_t, b1_r, w2_t, b2_r = prepped
    N, Cin, H, W = x_nchw.shape
    Cout = b_c.shape[0]
    hidden = w1_t.shape[1]
    num_classes = w2_t.shape[1]
    H2, W2 = H // 2, W // 2
    P = H2 * W2
    F = Cout * P

    # --- glue: pool-phase taps V[n, cin*16 + a*4 + b, p] = xp[n,cin,2pi+a,2pj+b]
    #     (4x expansion of the raw image in bf16, vs 9x full im2col before) ---
    xb = x_nchw.astype(jnp.bfloat16)
    xp = jnp.pad(xb, ((0, 0), (0, 0), (1, 1), (1, 1)))       # conv padding=1
    taps = [xp[:, :, a:a + H - 1:2, b:b + W - 1:2].reshape(N, Cin, P)
            for a in range(4) for b in range(4)]
    v = jnp.stack(taps, axis=2).reshape(N, Cin * 16, P)       # (N, 48, P)

    # --- Pallas kernel 1: fused conv + 2x2 maxpool + bias + ReLU ---
    TP = _pick_spatial_tile(P)
    pooled = pl.pallas_call(
        conv_relu_pool_kernel,
        out_shape=jax.ShapeDtypeStruct((N, Cout, P), jnp.bfloat16),
        grid=(N, P // TP),
        in_specs=[
            pl.BlockSpec((1, Cin * 16, TP), lambda n, t: (n, 0, t)),
            pl.BlockSpec((4 * Cout, Cin * 16), lambda n, t: (0, 0)),
            pl.BlockSpec((Cout, 1), lambda n, t: (0, 0)),
        ],
        out_specs=pl.BlockSpec((1, Cout, TP), lambda n, t: (n, 0, t)),
        compiler_params=pltpu.CompilerParams(
            dimension_semantics=("parallel", "parallel"),
            vmem_limit_bytes=48 * 1024 * 1024),
    )(v, w_all, b_c)

    # Channel-major pooled output -> PyTorch NCHW flatten is a pure reshape.
    feat = pooled.reshape(N, F)

    # --- Pallas kernel 2: fc1 -> ReLU -> fc2, tiled over the F reduction,
    #     hidden dim split across a parallel axis (v7x second TensorCore) ---
    TF = _pick_reduction_tile(F)
    HB = 2 if (hidden % 2 == 0 and (hidden // 2) % 128 == 0) else 1
    HS = hidden // HB
    partial = pl.pallas_call(
        mlp_kernel,
        out_shape=jax.ShapeDtypeStruct((HB, N, num_classes), jnp.float32),
        grid=(HB, F // TF),
        in_specs=[
            pl.BlockSpec((N, TF), lambda h, k: (0, k)),
            pl.BlockSpec((TF, HS), lambda h, k: (k, h)),
            pl.BlockSpec((1, HS), lambda h, k: (0, h)),
            pl.BlockSpec((HS, num_classes), lambda h, k: (h, 0)),
        ],
        out_specs=pl.BlockSpec((1, N, num_classes), lambda h, k: (h, 0, 0)),
        scratch_shapes=[pltpu.VMEM((N, HS), jnp.float32)],
        compiler_params=pltpu.CompilerParams(
            dimension_semantics=("parallel", "arbitrary"),
            vmem_limit_bytes=48 * 1024 * 1024),
    )(feat, w1_t, b1_r, w2_t)

    logits = partial.sum(axis=0) + b2_r        # tiny (HB, N, C) reduction + bias
    return logits


# ---------------------------------------------------------------------------
# Pure-JAX f32 reference (independent of the kernel's tap-gathering path)
# ---------------------------------------------------------------------------
def reference_forward(x_nchw, params):
    wc, bc, w1, b1, w2, b2 = params
    N, Cin, H, W = x_nchw.shape
    Cout = wc.shape[0]
    xp = jnp.pad(x_nchw, ((0, 0), (0, 0), (1, 1), (1, 1)))
    y = jnp.zeros((N, Cout, H, W), jnp.float32)
    for dy in range(3):
        for dx in range(3):
            y = y + jnp.einsum('nchw,oc->nohw',
                               xp[:, :, dy:dy + H, dx:dx + W], wc[:, :, dy, dx])
    y = jnp.maximum(y + bc[None, :, None, None], 0.0)
    y = y.reshape(N, Cout, H // 2, 2, W // 2, 2).max(axis=(3, 5))
    feat = y.reshape(N, -1)
    h = jnp.maximum(feat @ w1.T + b1, 0.0)
    return h @ w2.T + b2


# ---------------------------------------------------------------------------
if __name__ == "__main__":
    N, Cin, H, W = 2, 3, 32, 32
    Cout, hidden, num_classes = 16, 512, 10
    F = Cout * (H // 2) * (W // 2)

    key = jax.random.PRNGKey(0)
    k1, k2, k3, k4, k5, k6, k7 = jax.random.split(key, 7)
    params = (
        jax.random.normal(k1, (Cout, Cin, 3, 3), jnp.float32) * 0.1,       # conv1.weight
        jax.random.normal(k2, (Cout,), jnp.float32) * 0.1,                 # conv1.bias
        jax.random.normal(k3, (hidden, F), jnp.float32) * 0.02,            # fc1.weight
        jax.random.normal(k4, (hidden,), jnp.float32) * 0.02,              # fc1.bias
        jax.random.normal(k5, (num_classes, hidden), jnp.float32) * 0.05,  # fc2.weight
        jax.random.normal(k6, (num_classes,), jnp.float32) * 0.05,         # fc2.bias
    )
    x = jax.random.normal(k7, (N, Cin, H, W), jnp.float32)

    # One-time preprocessing (model-load time) -- kept OUTSIDE the jitted forward.
    prepped = prepare_params(params)

    fwd = jax.jit(galaxy_cnn_forward)
    out = jax.block_until_ready(fwd(x, prepped))
    ref = reference_forward(x, params)

    assert out.shape == (N, num_classes)
    max_err = float(jnp.max(jnp.abs(out - ref)))
    assert jnp.allclose(out, ref, rtol=3e-2, atol=3e-2), \
        f"mismatch vs reference (max abs err = {max_err})"

    print("KERNEL_OK")
</pallas_src>

<mosaic_0001>
module attributes {stable_mosaic.version = 11 : i64} {
  func.func @conv_relu_pool_kernel(%arg0: i32, %arg1: i32, %arg2: memref<1x48x256xbf16, #tpu.memory_space<vmem>>, %arg3: memref<64x48xbf16, #tpu.memory_space<vmem>>, %arg4: memref<16x1xf32, #tpu.memory_space<vmem>>, %arg5: memref<1x16x256xbf16, #tpu.memory_space<vmem>>) attributes {dimension_semantics = [#tpu.dimension_semantics<parallel>, #tpu.dimension_semantics<parallel>], iteration_bounds = array<i64: 2, 1>, scalar_prefetch = 0 : i64, scratch_operands = 0 : i64, tpu.core_type = #tpu.core_type<tc>, window_params = [{transform_indices = @transform_0, window_bounds = array<i64: 1, 48, 256>}, {pipeline_mode = #tpu.pipeline_mode<synchronous>, transform_indices = @transform_1, window_bounds = array<i64: 64, 48>}, {pipeline_mode = #tpu.pipeline_mode<synchronous>, transform_indices = @transform_2, window_bounds = array<i64: 16, 1>}, {transform_indices = @transform_3, window_bounds = array<i64: 1, 16, 256>}]} {
    %c0 = arith.constant 0 : index
    %c0_0 = arith.constant 0 : index
    %0 = vector.load %arg3[%c0, %c0_0] : memref<64x48xbf16, #tpu.memory_space<vmem>>, vector<64x48xbf16>
    %c0_1 = arith.constant 0 : index
    %c0_2 = arith.constant 0 : index
    %c0_3 = arith.constant 0 : index
    %1 = vector.load %arg2[%c0_1, %c0_2, %c0_3] : memref<1x48x256xbf16, #tpu.memory_space<vmem>>, vector<1x48x256xbf16>
    %2 = vector.shape_cast %1 : vector<1x48x256xbf16> to vector<48x256xbf16>
    %cst = arith.constant dense<0.000000e+00> : vector<64x256xf32>
    %3 = tpu.matmul %0, %2, %cst {dimension_numbers = #tpu.dot_dimension_numbers<[1], [0], [0], [1], [0, 0, 1, 1], [], []>} : vector<64x48xbf16>, vector<48x256xbf16>, vector<64x256xf32> -> vector<64x256xf32>
    %4 = vector.extract_strided_slice %3 {offsets = [0, 0], sizes = [16, 256], strides = [1, 1]} : vector<64x256xf32> to vector<16x256xf32>
    %5 = vector.extract_strided_slice %3 {offsets = [16, 0], sizes = [16, 256], strides = [1, 1]} : vector<64x256xf32> to vector<16x256xf32>
    %6 = arith.maximumf %4, %5 : vector<16x256xf32>
    %7 = vector.extract_strided_slice %3 {offsets = [32, 0], sizes = [16, 256], strides = [1, 1]} : vector<64x256xf32> to vector<16x256xf32>
    %8 = vector.extract_strided_slice %3 {offsets = [48, 0], sizes = [16, 256], strides = [1, 1]} : vector<64x256xf32> to vector<16x256xf32>
    %9 = arith.maximumf %7, %8 : vector<16x256xf32>
    %10 = arith.maximumf %6, %9 : vector<16x256xf32>
    %c0_4 = arith.constant 0 : index
    %c0_5 = arith.constant 0 : index
    %11 = vector.load %arg4[%c0_4, %c0_5] : memref<16x1xf32, #tpu.memory_space<vmem>>, vector<16x1xf32>
    %12 = vector.broadcast %11 : vector<16x1xf32> to vector<16x256xf32>
    %13 = arith.addf %10, %12 : vector<16x256xf32>
    %cst_6 = arith.constant 0.000000e+00 : f32
    %14 = vector.broadcast %cst_6 : f32 to vector<16x256xf32>
    %15 = arith.maximumf %13, %14 : vector<16x256xf32>
    %16 = arith.truncf %15 : vector<16x256xf32> to vector<16x256xbf16>
    %c0_7 = arith.constant 0 : index
    %c0_8 = arith.constant 0 : index
    %c0_9 = arith.constant 0 : index
    %17 = vector.load %arg5[%c0_7, %c0_8, %c0_9] : memref<1x16x256xbf16, #tpu.memory_space<vmem>>, vector<1x16x256xbf16>
    %18 = vector.shape_cast %17 : vector<1x16x256xbf16> to vector<16x256xbf16>
    %19 = vector.shape_cast %16 : vector<16x256xbf16> to vector<1x16x256xbf16>
    tpu.vector_store %arg5[%c0_7, %c0_8, %c0_9], %19 {strides = array<i32>} : memref<1x16x256xbf16, #tpu.memory_space<vmem>>, vector<1x16x256xbf16>,
    return
  }
  func.func @transform_0(%arg0: i32, %arg1: i32) -> (i32, i32, i32) {
    %c0_i32 = arith.constant 0 : i32
    %c0_i32_0 = arith.constant 0 : i32
    return %arg0, %c0_i32, %arg1 : i32, i32, i32
  }
  func.func @transform_1(%arg0: i32, %arg1: i32) -> (i32, i32) {
    %c0_i32 = arith.constant 0 : i32
    %c0_i32_0 = arith.constant 0 : i32
    %c0_i32_1 = arith.constant 0 : i32
    return %c0_i32, %c0_i32_0 : i32, i32
  }
  func.func @transform_2(%arg0: i32, %arg1: i32) -> (i32, i32) {
    %c0_i32 = arith.constant 0 : i32
    %c0_i32_0 = arith.constant 0 : i32
    %c0_i32_1 = arith.constant 0 : i32
    return %c0_i32, %c0_i32_0 : i32, i32
  }
  func.func @transform_3(%arg0: i32, %arg1: i32) -> (i32, i32, i32) {
    %c0_i32 = arith.constant 0 : i32
    %c0_i32_0 = arith.constant 0 : i32
    return %arg0, %c0_i32, %arg1 : i32, i32, i32
  }
}

module attributes {stable_mosaic.version = 11 : i64} {
  func.func @mlp_kernel(%arg0: i32, %arg1: i32, %arg2: memref<2x4096xbf16, #tpu.memory_space<vmem>>, %arg3: memref<4096x256xbf16, #tpu.memory_space<vmem>>, %arg4: memref<1x256xf32, #tpu.memory_space<vmem>>, %arg5: memref<256x10xbf16, #tpu.memory_space<vmem>>, %arg6: memref<1x2x10xf32, #tpu.memory_space<vmem>>, %arg7: memref<2x256xf32, #tpu.memory_space<vmem>>) attributes {dimension_semantics = [#tpu.dimension_semantics<parallel>, #tpu.dimension_semantics<arbitrary>], iteration_bounds = array<i64: 2, 1>, scalar_prefetch = 0 : i64, scratch_operands = 1 : i64, tpu.core_type = #tpu.core_type<tc>, window_params = [{transform_indices = @transform_0, window_bounds = array<i64: 2, 4096>}, {transform_indices = @transform_1, window_bounds = array<i64: 4096, 256>}, {transform_indices = @transform_2, window_bounds = array<i64: 1, 256>}, {transform_indices = @transform_3, window_bounds = array<i64: 256, 10>}, {transform_indices = @transform_4, window_bounds = array<i64: 1, 2, 10>}]} {
    %c0_i32 = arith.constant 0 : i32
    %0 = arith.cmpi eq, %arg1, %c0_i32 : i32
    %1 = arith.extui %0 : i1 to i32
    %c0_i32_0 = arith.constant 0 : i32
    %2 = arith.cmpi ne, %1, %c0_i32_0 : i32
    scf.if %2 {
      %cst_10 = arith.constant 0.000000e+00 : f32
      %12 = vector.broadcast %cst_10 : f32 to vector<2x256xf32>
      %c0_11 = arith.constant 0 : index
      %c0_12 = arith.constant 0 : index
      %13 = vector.load %arg7[%c0_11, %c0_12] : memref<2x256xf32, #tpu.memory_space<vmem>>, vector<2x256xf32>
      tpu.vector_store %arg7[%c0_11, %c0_12], %12 {strides = array<i32>} : memref<2x256xf32, #tpu.memory_space<vmem>>, vector<2x256xf32>,
    } else {
    }
    %c0 = arith.constant 0 : index
    %c0_1 = arith.constant 0 : index
    %3 = vector.load %arg7[%c0, %c0_1] : memref<2x256xf32, #tpu.memory_space<vmem>>, vector<2x256xf32>
    %c0_2 = arith.constant 0 : index
    %c0_3 = arith.constant 0 : index
    %4 = vector.load %arg2[%c0_2, %c0_3] : memref<2x4096xbf16, #tpu.memory_space<vmem>>, vector<2x4096xbf16>
    %c0_4 = arith.constant 0 : index
    %c0_5 = arith.constant 0 : index
    %5 = vector.load %arg3[%c0_4, %c0_5] : memref<4096x256xbf16, #tpu.memory_space<vmem>>, vector<4096x256xbf16>
    %cst = arith.constant dense<0.000000e+00> : vector<2x256xf32>
    %6 = tpu.matmul %4, %5, %cst {dimension_numbers = #tpu.dot_dimension_numbers<[1], [0], [0], [1], [0, 0, 1, 1], [], []>} : vector<2x4096xbf16>, vector<4096x256xbf16>, vector<2x256xf32> -> vector<2x256xf32>
    %7 = arith.addf %3, %6 : vector<2x256xf32>
    %c0_6 = arith.constant 0 : index
    %c0_7 = arith.constant 0 : index
    %8 = vector.load %arg7[%c0_6, %c0_7] : memref<2x256xf32, #tpu.memory_space<vmem>>, vector<2x256xf32>
    tpu.vector_store %arg7[%c0_6, %c0_7], %7 {strides = array<i32>} : memref<2x256xf32, #tpu.memory_space<vmem>>, vector<2x256xf32>,
    %c0_i32_8 = arith.constant 0 : i32
    %9 = arith.cmpi eq, %arg1, %c0_i32_8 : i32
    %10 = arith.extui %9 : i1 to i32
    %c0_i32_9 = arith.constant 0 : i32
    %11 = arith.cmpi ne, %10, %c0_i32_9 : i32
    scf.if %11 {
      %c0_10 = arith.constant 0 : index
      %c0_11 = arith.constant 0 : index
      %12 = vector.load %arg7[%c0_10, %c0_11] : memref<2x256xf32, #tpu.memory_space<vmem>>, vector<2x256xf32>
      %c0_12 = arith.constant 0 : index
      %c0_13 = arith.constant 0 : index
      %13 = vector.load %arg4[%c0_12, %c0_13] : memref<1x256xf32, #tpu.memory_space<vmem>>, vector<1x256xf32>
      %14 = vector.broadcast %13 : vector<1x256xf32> to vector<2x256xf32>
      %15 = arith.addf %12, %14 : vector<2x256xf32>
      %cst_14 = arith.constant 0.000000e+00 : f32
      %16 = vector.broadcast %cst_14 : f32 to vector<2x256xf32>
      %17 = arith.maximumf %15, %16 : vector<2x256xf32>
      %18 = arith.truncf %17 : vector<2x256xf32> to vector<2x256xbf16>
      %c0_15 = arith.constant 0 : index
      %c0_16 = arith.constant 0 : index
      %19 = vector.load %arg5[%c0_15, %c0_16] : memref<256x10xbf16, #tpu.memory_space<vmem>>, vector<256x10xbf16>
      %cst_17 = arith.constant dense<0.000000e+00> : vector<2x10xf32>
      %20 = tpu.matmul %18, %19, %cst_17 {dimension_numbers = #tpu.dot_dimension_numbers<[1], [0], [0], [1], [0, 0, 1, 1], [], []>} : vector<2x256xbf16>, vector<256x10xbf16>, vector<2x10xf32> -> vector<2x10xf32>
      %c0_18 = arith.constant 0 : index
      %c0_19 = arith.constant 0 : index
      %c0_20 = arith.constant 0 : index
      %21 = vector.load %arg6[%c0_18, %c0_19, %c0_20] : memref<1x2x10xf32, #tpu.memory_space<vmem>>, vector<1x2x10xf32>
      %22 = vector.shape_cast %21 : vector<1x2x10xf32> to vector<2x10xf32>
      %23 = vector.shape_cast %20 : vector<2x10xf32> to vector<1x2x10xf32>
      tpu.vector_store %arg6[%c0_18, %c0_19, %c0_20], %23 {strides = array<i32>} : memref<1x2x10xf32, #tpu.memory_space<vmem>>, vector<1x2x10xf32>,
    } else {
    }
    return
  }
  func.func @transform_0(%arg0: i32, %arg1: i32) -> (i32, i32) {
    %c0_i32 = arith.constant 0 : i32
    %c0_i32_0 = arith.constant 0 : i32
    return %c0_i32, %arg1 : i32, i32
  }
  func.func @transform_1(%arg0: i32, %arg1: i32) -> (i32, i32) {
    %c0_i32 = arith.constant 0 : i32
    return %arg1, %arg0 : i32, i32
  }
  func.func @transform_2(%arg0: i32, %arg1: i32) -> (i32, i32) {
    %c0_i32 = arith.constant 0 : i32
    %c0_i32_0 = arith.constant 0 : i32
    return %c0_i32, %arg0 : i32, i32
  }
  func.func @transform_3(%arg0: i32, %arg1: i32) -> (i32, i32) {
    %c0_i32 = arith.constant 0 : i32
    %c0_i32_0 = arith.constant 0 : i32
    return %arg0, %c0_i32 : i32, i32
  }
  func.func @transform_4(%arg0: i32, %arg1: i32) -> (i32, i32, i32) {
    %c0_i32 = arith.constant 0 : i32
    %c0_i32_0 = arith.constant 0 : i32
    %c0_i32_1 = arith.constant 0 : i32
    return %arg0, %c0_i32, %c0_i32_0 : i32, i32, i32
  }
}

</mosaic_0001>

<bundles_post_ra>
// kernel: galaxy_cnn_forward.2
= control target key start
LH: loop header
LB: loop body
LE: loop exit
PB: predicated region body
PF: predicated region fallthrough
CT: control target
= control target key end

     0   :  { %s614_s12 = smov 0   ;;  %s616_s13 = smov 0   ;;  %s669_s0 = inlined_call_operand.vmem [shape: bf16[2,48,256], index: 0, kind: input, shape index: {}]   ;;  %s670_s1 = inlined_call_operand.vmem [shape: bf16[64,48], index: 1, kind: input, shape index: {}]   ;;  %s671_s2 = inlined_call_operand.vmem [shape: f32[16,1], index: 2, kind: input, shape index: {}]   ;;  %s672_s3 = inlined_call_operand.vmem [shape: bf16[2,16,256], index: 3, kind: output, shape index: {}]  }
   0x1   :  { %s618_s14 = smov 0  }
   0x2 LB: > { %s25_s15 = sadd.s32 1, %s587_s13  ;;  %p498_p0 = scmp.ge.s32.totalorder %s591_s14, 1  ;;  %s591_s14 = sphi %s618_s14, %s13_s14   ;;  %s587_s13 = sphi %s616_s13, %s674_s13   ;;  %s583_s12 = sphi %s614_s12, %s673_s12  }
   0x3   : > { %p27_p1 = scmp.ge.s32.totalorder %s25_s15, 2  ;;  %p158_p2 = scmp.lt.s32.totalorder %s591_s14, 3 }
   0x5   : > { %s676_s15 = smov (%p27_p1, %s25_s15), 0  ;;  %p159_p3 = pnand %p498_p0, %p158_p2 }
   0x6   : > { %p191_p4 = scmp.lt.s32.totalorder (!%p159_p3), %s583_s12, 1  ;;  %v593_v0 = vmov (!%p159_p3), 0   ;;  %v373_v1 = vld [vmem:[%s671_s2] sm:$0xff] (!%p159_p3)  ;;  %v374_v5 = vld [vmem:[%s671_s2 + $0x8] sm:$0xff] (!%p159_p3)  ;;  %v566_v10 = vld [vmem:[%s670_s1 + $0x10] sm:$0xff] (!%p159_p3)   ;;  %vm275_vm0 = vcmask (!%p159_p3), 392192  }
   0x7   : > { %162 = sbr.rel (%p159_p3) target bundleno = 265 (0x109), region = 32  ;;  %320 = vmatprep.mubr.bf16.mxu0 (!%p159_p3), %v593_v0  ;;  %340 = vmatprep.mubr.bf16.mxu1 (!%p159_p3), %v593_v0  ;;  %v565_v9 = vld [vmem:[%s670_s1] sm:$0xff] (!%p159_p3)   ;;  %v567_v11 = vld [vmem:[%s670_s1 + $0x8] sm:$0xff] (!%p159_p3)   ;;  %v568_v12 = vld [vmem:[%s670_s1 + $0x18] sm:$0xff] (!%p159_p3)  }
   0x8   : > { %555 = vset.pattern.permute.xlu0 (!%p159_p3), %v593_v0 }
   0x9   : > { %377 = vperm.xlu0 (!%p159_p3), %555, %v373_v1  }
   0xd   : > { %382 = vperm.xlu0 (!%p159_p3), %555, %v374_v5  }
   0xe   : > { %s678_s12 = smov (!%p191_p4, %s583_s12), 1 }
   0xf   : > { %s529_s16 = smul.u32 48, %s678_s12  ;;  %s520_s5 = sshll.u32 %s678_s12, 4 }
  0x10   : > { %s208_s8 = scalar_lea.vmem %s672_s3, %s520_s5 }
  0x11   : > { %s198_s21 = scalar_lea.vmem %s669_s0, %s529_s16 }
  0x12   : > { %v556_v2 = vld [vmem:[%s198_s21 + $0x4] ss:$8 sps:$4 sm:$0xff]   ;;  %v558_v3 = vld [vmem:[%s198_s21] ss:$8 sps:$4 sm:$0xff]   ;;  %v559_v4 = vld [vmem:[%s198_s21 + $0x14] ss:$8 sps:$4 sm:$0xff]  }
  0x13   : > { %288 = vmatprep.subr.bf16.mxu0 %v556_v2  ;;  %523 = vmatprep.subr.bf16.mxu1 %v556_v2  ;;  %v561_v6 = vld [vmem:[%s198_s21 + $0x10] ss:$8 sps:$4 sm:$0xff]   ;;  %v562_v7 = vld [vmem:[%s198_s21 + $0x24] ss:$8 sps:$4 sm:$0xff]   ;;  %v564_v8 = vld [vmem:[%s198_s21 + $0x20] ss:$8 sps:$4 sm:$0xff]  }
  0x14   : > { %289 = vmatpush1.bf16.msra.mxu0 %v558_v3  ;;  %526 = vmatpush1.bf16.msra.mxu1 %v558_v3 }
  0x15   : > { %290 = vmatprep.subr.bf16.mxu0 %v559_v4  ;;  %524 = vmatprep.subr.bf16.mxu1 %v559_v4 }
  0x18   : > { %291 = vmatpush1.bf16.msra.mxu0 %v561_v6  ;;  %527 = vmatpush1.bf16.msra.mxu1 %v561_v6 }
  0x19   : > { %292 = vmatprep.subr.bf16.mxu0 %v562_v7  ;;  %525 = vmatprep.subr.bf16.mxu1 %v562_v7 }
  0x1c   : > { %293 = vmatpush1.bf16.msra.mxu0 %v564_v8  ;;  %528 = vmatpush1.bf16.msra.mxu1 %v564_v8 }
  0x1f   : > { %512 = vmatmul.mubr.msk.bf16.vlgmr.msra.gmra.mrb[0].mxu0 %vm275_vm0, %v565_v9  ;;  %514 = vmatmul.mubr.msk.bf16.vlgmr.msra.gmra.mrb[0].mxu1 %vm275_vm0, %v566_v10 }
  0x20   : > { %330 = vmatprep.mubr.bf16.mxu0 %v593_v0  ;;  %350 = vmatprep.mubr.bf16.mxu1 %v593_v0 }
  0x27   : > { %513 = vmatmul.mubr.msk.bf16.gmra.mrb[4].mxu0 %vm275_vm0, %v567_v11  ;;  %515 = vmatmul.mubr.msk.bf16.gmra.mrb[4].mxu1 %vm275_vm0, %v568_v12 }
  0x88   : > { %v378_v21 = vpop.permute.xlu0 %377 }
  0x8c   : > { %v383_v43 = vpop.permute.xlu0 %382 }
  0xf2   : > { %v322_v13 = vpop.f32.mrb[0].mxu0  ;;  %v342_v14 = vpop.f32.mrb[0].mxu1 }
  0xf3   : > { %v324_v15 = vpop.f32.mrb[1].mxu0  ;;  %v344_v16 = vpop.f32.mrb[1].mxu1 }
  0xf4   : > { %v326_v17 = vpop.f32.mrb[2].mxu0  ;;  %v346_v18 = vpop.f32.mrb[2].mxu1 }
  0xf5   : > { %v328_v19 = vpop.f32.mrb[3].mxu0  ;;  %v348_v20 = vpop.f32.mrb[3].mxu1 }
  0xfa   : > { %v332_v22 = vpop.f32.mrb[4].mxu0  ;;  %v352_v23 = vpop.f32.mrb[4].mxu1 }
  0xfb   : > { %v361_v24 = vmax.f32 %v322_v13, %v332_v22  ;;  %v365_v25 = vmax.f32 %v342_v14, %v352_v23  ;;  %v334_v26 = vpop.f32.mrb[5].mxu0  ;;  %v354_v27 = vpop.f32.mrb[5].mxu1 }
  0xfc   : > { %v362_v28 = vmax.f32 %v324_v15, %v334_v26  ;;  %v366_v29 = vmax.f32 %v344_v16, %v354_v27  ;;  %v336_v30 = vpop.f32.mrb[6].mxu0  ;;  %v356_v31 = vpop.f32.mrb[6].mxu1 }
  0xfd   : > { %v369_v32 = vmax.f32 %v361_v24, %v365_v25  ;;  %v363_v33 = vmax.f32 %v326_v17, %v336_v30  ;;  %v367_v34 = vmax.f32 %v346_v18, %v356_v31  ;;  %v338_v35 = vpop.f32.mrb[7].mxu0  ;;  %v358_v36 = vpop.f32.mrb[7].mxu1 }
  0xfe   : > { %v370_v37 = vmax.f32 %v362_v28, %v366_v29  ;;  %v364_v38 = vmax.f32 %v328_v19, %v338_v35  ;;  %v368_v39 = vmax.f32 %v348_v20, %v358_v36 }
  0xff   : > { %v385_v40 = vadd.f32 %v378_v21, %v369_v32  ;;  %v371_v41 = vmax.f32 %v363_v33, %v367_v34 }
 0x100   : > { %v386_v42 = vadd.f32 %v378_v21, %v370_v37  ;;  %v372_v44 = vmax.f32 %v364_v38, %v368_v39 }
 0x101   : > { %v389_v45 = vmax.f32 %v385_v40, 0.0  ;;  %v387_v46 = vadd.f32 %v383_v43, %v371_v41 }
 0x102   : > { %v390_v47 = vmax.f32 %v386_v42, 0.0  ;;  %v388_v48 = vadd.f32 %v383_v43, %v372_v44 }
 0x103   : > { %v391_v49 = vmax.f32 %v387_v46, 0.0 }
 0x104   : > { %v521_v50 = vpack.c.bf16 %v390_v47, %v389_v45  ;;  %v392_v51 = vmax.f32 %v388_v48, 0.0 }
 0x106   : > { %405 = vst [vmem:[%s208_s8] sm:$0xff] %v521_v50  ;;  %v522_v52 = vpack.c.bf16 %v392_v51, %v391_v49 }
 0x108   : > { %406 = vst [vmem:[%s208_s8 + $0x8] sm:$0xff] %v522_v52 }
 0x109 PF: > { %s13_s14 = sadd.s32 1, %s591_s14   ;;  %s673_s12 = smov %s587_s13 }
 0x10a   : > { %p10_p5 = scmp.ge.s32.totalorder %s13_s14, 4   ;;  %s674_s13 = smov %s676_s15 }
 0x10c   :  { %12 = sbr.rel (!%p10_p5) target bundleno = 2 (0x2), region = 62 }

// kernel: galaxy_cnn_forward.3
= control target key start
LH: loop header
LB: loop body
LE: loop exit
PB: predicated region body
PF: predicated region fallthrough
CT: control target
= control target key end

     0   :  { %9 = vsyncpa [#allocation4], 0  ;;  %s7131_s0 = inlined_call_operand.vmem [shape: bf16[2,4096], index: 0, kind: input, shape index: {}]   ;;  %s7132_s1 = inlined_call_operand.hbm [shape: bf16[4096,512], index: 1, kind: input, shape index: {}]   ;;  %s7133_s2 = inlined_call_operand.hbm [shape: f32[1,512], index: 2, kind: input, shape index: {}]   ;;  %s7134_s3 = inlined_call_operand.vmem [shape: bf16[512,10], index: 3, kind: input, shape index: {}]   ;;  %s7135_s4 = inlined_call_operand.vmem [shape: f32[2,2,10], index: 4, kind: output, shape index: {}]  }
   0x1   :  { %11 = vsyncpa [#allocation4 + $0x1], 0 }
   0x2   :  { %12 = vsyncpa [#allocation6], 0 }
   0x3   :  { %14 = vsyncpa [#allocation6 + $0x1], 0  ;;  %s6262_s15 = smov 0   ;;  %s6264_s16 = smov 0  }
   0x4   :  { %s6266_s17 = smov 0   ;;  %s6268_s18 = smov 0  }
   0x5   :  { %s6270_s19 = smov 0   ;;  %s6272_s20 = smov 0  }
   0x6 LB: > { %s4630_s21 = sadd.s32 4294967295, %s6227_s20   ;;  %s32_s22 = sadd.s32 1, %s6223_s19  ;;  %s6227_s20 = sphi %s6272_s20, %s20_s20   ;;  %s6223_s19 = sphi %s6270_s19, %s7148_s19   ;;  %s6219_s18 = sphi %s6268_s18, %s7147_s18   ;;  %s6215_s17 = sphi %s6266_s17, %s7146_s17   ;;  %s6211_s16 = sphi %s6264_s16, %s7145_s16   ;;  %s6207_s15 = sphi %s6262_s15, %s7144_s15  }
   0x7   : > { %p34_p0 = scmp.ge.s32.totalorder %s32_s22, 2  ;;  %s67_s23 = sadd.s32 1, %s6215_s17 }
   0x8   : > { %p74_p1 = scmp.ne.s32.totalorder %s6215_s17, %s6211_s16  ;;  %p75_p2 = scmp.eq.s32.totalorder %s6227_s20, 0 }
   0x9   : > { %s7150_s22 = smov (%p34_p0, %s32_s22), 0  ;;  %p80_p4 = scmp.ne.s32.totalorder %s6211_s16, %s6207_s15 }
   0xa   : > { %p6298_p3 = por %p75_p2, %p74_p1  ;;  %s63_s25 = ssub.s32 %s6223_s19, %s7150_s22 }
   0xb   : > { %p81_p5 = scmp.eq.s32.totalorder %s4630_s21, 0  ;;  %p65_p6 = scmp.eq.s32.totalorder %s63_s25, 0 }
   0xc   : > { %p5270_p8 = scmp.lt.s32.totalorder %s6227_s20, 2  ;;  %s6314_s28 = sand.u32 1, %s6215_s17  }
   0xd   : > { %p6305_p7 = por %p81_p5, %p80_p4  ;;  %s5177_s29 = sshll.u32 %s6223_s19, 7 }
   0xe   : > { %s6311_s27 = scalar_select %p65_p6, %s6215_s17, %s67_s23  }
   0xf   : > { %s7138_s26 = scalar_select %p6305_p7, 1, 0 }
  0x10   : > { %s4635_s30 = sshll.u32 %s6314_s28, 12  ;;  %s6321_s7 = scalar_lea.hbm %s7132_s1, %s5177_s29 }
  0x11   : > { %s194_s8 = scalar_lea.vmem [#allocation3], %s4635_s30  ;;  %p6325_p9 = pnand %p5270_p8, %p6298_p3 }
  0x12   : > { %s204_s9 = sshll.u32 %s194_s8, 4  ;;  %s191_s11 = scalar_lea.sflag [#allocation4], %s6314_s28  ;;  %s6329_s9 = int_to_ptr.vmem [resolvable:$true] %s204_s9 }
  0x13   : > { %s6113_s12 = scalar_lea.hbm %s6321_s7, 65536  ;;  %p6115_p12 = pneg %p6325_p9 }
  0x14   : > { %p6114_p11 = scmp.ne.s32.totalorder %s6321_s7, %s6113_s12  ;;  %s6118_s15 = scalar_lea.hbm %s7132_s1, 131072 }
  0x15   : > { %p6119_p1 = scmp.lt.u32.totalorder %s6321_s7, %s7132_s1  ;;  %p6120_p2 = scmp.lt.u32.totalorder %s6118_s15, %s6113_s12 }
  0x16   : > { %p6116_p13 = pnand %p6115_p12, %p6114_p11  ;;  %p6122_p4 = scmp.lt.u32.totalorder %s6113_s12, %s6321_s7 }
  0x17   : > { %p6121_p3 = por %p6120_p2, %p6119_p1 }
  0x18   : > { %p6117_p0 = pneg %p6116_p13 }
  0x19   : > { %p6123_p5 = por %p6122_p4, %p6121_p3 }
  0x1b   : > { %p6124_p6 = pnand %p6123_p5, %p6117_p0 }
  0x1d   : > { %6127 = shalt.err (!%p6124_p6)
}
  0x1e   : > { %s6128_s24 = scalar_lea.vmem %s6329_s9, 65536  ;;  %s6229_s25 = smov [#allocation3]  }
  0x1f   : > { %p6129_p8 = scmp.ne.s32.totalorder %s6329_s9, %s6128_s24  ;;  %s6133_s29 = sshll.u32 %s6229_s25, 4  ;;  %s6134_s29 = int_to_ptr.vmem [resolvable:$false] %s6133_s29 }
  0x20   : > { %s6135_s30 = scalar_lea.vmem %s6134_s29, 131072  ;;  %p6136_p10 = scmp.lt.s32.totalorder %s6329_s9, %s6134_s29 }
  0x21   : > { %p6131_p11 = pnand %p6129_p8, %p6115_p12  ;;  %p6137_p1 = scmp.lt.s32.totalorder %s6135_s30, %s6128_s24 }
  0x23   : > { %p6132_p13 = pneg %p6131_p11  ;;  %p6138_p2 = por %p6137_p1, %p6136_p10 }
  0x25   : > { %p6139_p3 = pnand %p6138_p2, %p6132_p13 }
  0x27   : > { %6142 = shalt.err (!%p6139_p3)
}
  0x28   : > { %s6230_s5 = smov 256   ;;  %s6231_s6 = smov 128  }
  0x29   : > { %s6232_s8 = smov 8   ;;  %p240_p0 = scmp.lt.s32.totalorder %s6227_s20, 3 }
  0x2a   : > { %5266 = dma.hbm_to_vmem [thread:$0]  (!%p6325_p9), %s6321_s7, 65536, %s6329_s9, %s191_s11, %s6230_s5, %s6231_s6, %s6232_s8  }
  0x2b   : > { %s4638_s12 = sshll.u32 %s6314_s28, 1  ;;  %s5178_s13 = sshll.u32 %s6223_s19, 5 }
  0x2c   : > { %p7140_p10 = scmp.ge.s32.totalorder %s6227_s20, 1  ;;  %s6372_s23 = scalar_lea.hbm %s7133_s2, %s5178_s13 }
  0x2d   : > { %s218_s24 = scalar_lea.vmem [#allocation5], %s4638_s12  ;;  %s215_s7 = scalar_lea.sflag [#allocation6], %s6314_s28 }
  0x2e   : > { %p6365_p4 = pnand %p7140_p10, %p240_p0  ;;  %s226_s25 = sshll.u32 %s218_s24, 4  ;;  %s227_s25 = int_to_ptr.vmem [resolvable:$true] %s226_s25 }
  0x2f   : > { %s6143_s9 = scalar_lea.hbm %s6372_s23, 32  ;;  %s6148_s30 = scalar_lea.hbm %s7133_s2, 64 }
  0x30   : > { %s7141_s14 = scalar_select %p6365_p4, 1, 0 }
  0x31   : > { %p6144_p5 = scmp.ne.s32.totalorder %s6372_s23, %s6143_s9  ;;  %p6149_p11 = scmp.lt.u32.totalorder %s6372_s23, %s7133_s2 }
  0x32   : > { %p6150_p13 = scmp.lt.u32.totalorder %s6148_s30, %s6143_s9  ;;  %p6152_p2 = scmp.lt.u32.totalorder %s6143_s9, %s6372_s23 }
  0x33   : > { %p6146_p6 = pnand %p6144_p5, %p6115_p12 }
  0x34   : > { %p6151_p1 = por %p6150_p13, %p6149_p11 }
  0x35   : > { %p6147_p8 = pneg %p6146_p6 }
  0x36   : > { %p6153_p3 = por %p6152_p2, %p6151_p1 }
  0x38   : > { %p6154_p0 = pnand %p6153_p3, %p6147_p8 }
  0x3a   : > { %6157 = shalt.err (!%p6154_p0)
}
  0x3b   : > { %s6158_s28 = scalar_lea.vmem %s227_s25, 32  ;;  %s6233_s8 = smov [#allocation5]  }
  0x3c   : > { %p6159_p10 = scmp.ne.s32.totalorder %s227_s25, %s6158_s28  ;;  %s6163_s12 = sshll.u32 %s6233_s8, 4  ;;  %s6164_s12 = int_to_ptr.vmem [resolvable:$false] %s6163_s12 }
  0x3d   : > { %s6165_s13 = scalar_lea.vmem %s6164_s12, 64  ;;  %p6166_p7 = scmp.lt.s32.totalorder %s227_s25, %s6164_s12 }
  0x3e   : > { %p6161_p5 = pnand %p6159_p10, %p6115_p12  ;;  %p6167_p4 = scmp.lt.s32.totalorder %s6165_s13, %s6158_s28 }
  0x40   : > { %p6162_p6 = pneg %p6161_p5  ;;  %p6168_p11 = por %p6167_p4, %p6166_p7 }
  0x42   : > { %p6169_p13 = pnand %p6168_p11, %p6162_p6 }
  0x44   : > { %6172 = shalt.err (!%p6169_p13)
}
  0x45   : > { %5269 = dma.hbm_to_vmem [thread:$0]  (!%p6325_p9), %s6372_s23, 32, %s227_s25, %s215_s7  }
  0x46   : > { %p7142_p8 = scmp.ne.s32.totalorder %s7141_s14, 0 }
  0x47   : > { %s246_s15 = sand.u32 (!%p7142_p8), 1, %s6211_s16   ;;  %p7143_p12 = scmp.ne.s32.totalorder (!%p7142_p8), %s7138_s26, 0 }
  0x48   : > { %244 = sbr.rel (%p7142_p8) target bundleno = 1053 (0x41d), region = 36  ;;  %s4642_s21 = sshll.u32 (!%p7142_p8), %s246_s15, 12 }
  0x49   : > { %s247_s24 = scalar_lea.sflag (!%p7142_p8), [#allocation4], %s246_s15  ;;  %s6397_s9 = scalar_lea.vmem (!%p7142_p8), [#allocation3], %s4642_s21 }
  0x4f   : > { %6198 = dma.done.wait (%p7143_p12), %s247_s24, 65536  }
  0x50   : > { %6200 = vsyncadd (%p7143_p12), %s247_s24, 4294901760  ;;  %s4643_s11 = sshll.u32 %s246_s15, 1  ;;  %s256_s10 = scalar_lea.sflag [#allocation6], %s246_s15 }
  0x51   : > { %s6403_s29 = scalar_lea.vmem [#allocation5], %s4643_s11 }
  0x52   : > { %6202 = dma.done.wait (%p7143_p12), %s256_s10, 32  }
  0x53   : > { %6204 = vsyncadd (%p7143_p12), %s256_s10, 4294967264  ;;  %v5325_v0 = vld [vmem:[%s6397_s9 + $0x4] ss:$8 sps:$4 sm:$0xff]   ;;  %v5329_v2 = vld [vmem:[%s6397_s9] ss:$8 sps:$4 sm:$0xff]   ;;  %v846_v38 = vlaneseq  ;;  %s4644_s28 = sshll.u32 %s6219_s18, 5 }
  0x54   : > { %v5327_v1 = vld [vmem:[%s6397_s9 + $0x804] ss:$8 sps:$4 sm:$0xff]   ;;  %3630 = vmatprep.subr.bf16.mxu1 %v5325_v0  ;;  %v5330_v3 = vld [vmem:[%s6397_s9 + $0x800] ss:$8 sps:$4 sm:$0xff]   ;;  %v5331_v4 = vld [vmem:[%s6397_s9 + $0x14] ss:$8 sps:$4 sm:$0xff]  }
  0x55   : > { %3958 = vmatprep.subr.bf16.mxu0 %v5327_v1  ;;  %3631 = vmatpush1.bf16.msra.mxu1 %v5329_v2  ;;  %v5333_v5 = vld [vmem:[%s6397_s9 + $0x814] ss:$8 sps:$4 sm:$0xff]   ;;  %v5335_v6 = vld [vmem:[%s6397_s9 + $0x10] ss:$8 sps:$4 sm:$0xff]   ;;  %v5337_v8 = vld [vmem:[%s6397_s9 + $0x24] ss:$8 sps:$4 sm:$0xff]  }
  0x56   : > { %3959 = vmatpush1.bf16.msra.mxu0 %v5330_v3  ;;  %3632 = vmatprep.subr.bf16.mxu1 %v5331_v4  ;;  %v5336_v7 = vld [vmem:[%s6397_s9 + $0x810] ss:$8 sps:$4 sm:$0xff]   ;;  %v5339_v9 = vld [vmem:[%s6397_s9 + $0x824] ss:$8 sps:$4 sm:$0xff]   ;;  %v5341_v10 = vld [vmem:[%s6397_s9 + $0x20] ss:$8 sps:$4 sm:$0xff]  }
  0x57   : > { %3960 = vmatprep.subr.bf16.mxu0 %v5333_v5  ;;  %v5342_v11 = vld [vmem:[%s6397_s9 + $0x820] ss:$8 sps:$4 sm:$0xff]   ;;  %v5343_v12 = vld [vmem:[%s6397_s9 + $0x34] ss:$8 sps:$4 sm:$0xff]   ;;  %v5347_v14 = vld [vmem:[%s6397_s9 + $0x30] ss:$8 sps:$4 sm:$0xff]  }
  0x58   : > { %v5345_v13 = vld [vmem:[%s6397_s9 + $0x834] ss:$8 sps:$4 sm:$0xff]   ;;  %v5348_v15 = vld [vmem:[%s6397_s9 + $0x830] ss:$8 sps:$4 sm:$0xff]   ;;  %v5349_v16 = vld [vmem:[%s6397_s9 + $0x44] ss:$8 sps:$4 sm:$0xff]  }
  0x59   : > { %3633 = vmatpush1.bf16.msra.mxu1 %v5335_v6  ;;  %v5351_v17 = vld [vmem:[%s6397_s9 + $0x844] ss:$8 sps:$4 sm:$0xff]   ;;  %v5353_v18 = vld [vmem:[%s6397_s9 + $0x40] ss:$8 sps:$4 sm:$0xff]   ;;  %v5355_v20 = vld [vmem:[%s6397_s9 + $0x54] ss:$8 sps:$4 sm:$0xff]  }
  0x5a   : > { %3961 = vmatpush1.bf16.msra.mxu0 %v5336_v7  ;;  %3634 = vmatprep.subr.bf16.mxu1 %v5337_v8  ;;  %v5354_v19 = vld [vmem:[%s6397_s9 + $0x840] ss:$8 sps:$4 sm:$0xff]   ;;  %v5357_v21 = vld [vmem:[%s6397_s9 + $0x854] ss:$8 sps:$4 sm:$0xff]   ;;  %v5359_v22 = vld [vmem:[%s6397_s9 + $0x50] ss:$8 sps:$4 sm:$0xff]  }
  0x5b   : > { %3962 = vmatprep.subr.bf16.mxu0 %v5339_v9  ;;  %v5360_v23 = vld [vmem:[%s6397_s9 + $0x850] ss:$8 sps:$4 sm:$0xff]   ;;  %v5361_v24 = vld [vmem:[%s6397_s9 + $0x64] ss:$8 sps:$4 sm:$0xff]   ;;  %v5365_v26 = vld [vmem:[%s6397_s9 + $0x60] ss:$8 sps:$4 sm:$0xff]  }
  0x5c   : > { %v5363_v25 = vld [vmem:[%s6397_s9 + $0x864] ss:$8 sps:$4 sm:$0xff]   ;;  %v5366_v27 = vld [vmem:[%s6397_s9 + $0x860] ss:$8 sps:$4 sm:$0xff]   ;;  %v5367_v28 = vld [vmem:[%s6397_s9 + $0x74] ss:$8 sps:$4 sm:$0xff]  }
  0x5d   : > { %3635 = vmatpush1.bf16.msra.mxu1 %v5341_v10  ;;  %v5369_v29 = vld [vmem:[%s6397_s9 + $0x874] ss:$8 sps:$4 sm:$0xff]   ;;  %v5371_v30 = vld [vmem:[%s6397_s9 + $0x70] ss:$8 sps:$4 sm:$0xff]   ;;  %v5373_v32 = vld [vmem:[%s6397_s9 + $0x84] ss:$8 sps:$4 sm:$0xff]  }
  0x5e   : > { %3963 = vmatpush1.bf16.msra.mxu0 %v5342_v11  ;;  %3636 = vmatprep.subr.bf16.mxu1 %v5343_v12  ;;  %v5372_v31 = vld [vmem:[%s6397_s9 + $0x870] ss:$8 sps:$4 sm:$0xff]   ;;  %v5375_v33 = vld [vmem:[%s6397_s9 + $0x884] ss:$8 sps:$4 sm:$0xff]   ;;  %v5377_v34 = vld [vmem:[%s6397_s9 + $0x80] ss:$8 sps:$4 sm:$0xff]  }
  0x5f   : > { %3964 = vmatprep.subr.bf16.mxu0 %v5345_v13  ;;  %v5378_v35 = vld [vmem:[%s6397_s9 + $0x880] ss:$8 sps:$4 sm:$0xff]   ;;  %v6234_v36 = vmov 1966171168   ;;  %v5379_v39 = vld [vmem:[%s6397_s9 + $0x94] ss:$8 sps:$4 sm:$0xff]  }
  0x60   : > { %v844_v37 = vunpack.c.l.s4 %v6234_v36  ;;  %v5381_v40 = vld [vmem:[%s6397_s9 + $0x894] ss:$8 sps:$4 sm:$0xff]   ;;  %v5383_v41 = vld [vmem:[%s6397_s9 + $0x90] ss:$8 sps:$4 sm:$0xff]   ;;  %v6448_v43 = vshrl.u32 %v846_v38, 7  ;;  %p306_p7 = scmp.lt.s32.totalorder %s4644_s28, 63 }
  0x61   : > { %3637 = vmatpush1.bf16.msra.mxu1 %v5347_v14  ;;  %v5384_v44 = vld [vmem:[%s6397_s9 + $0x890] ss:$8 sps:$4 sm:$0xff]   ;;  %v5385_v45 = vld [vmem:[%s6397_s9 + $0xa4] ss:$8 sps:$4 sm:$0xff]   ;;  %v5389_v47 = vld [vmem:[%s6397_s9 + $0xa0] ss:$8 sps:$4 sm:$0xff]  }
  0x62   : > { %3965 = vmatpush1.bf16.msra.mxu0 %v5348_v15  ;;  %3638 = vmatprep.subr.bf16.mxu1 %v5349_v16  ;;  %v845_v42 = vunpack.c.0.s8 %v844_v37  ;;  %v5387_v46 = vld [vmem:[%s6397_s9 + $0x8a4] ss:$8 sps:$4 sm:$0xff]   ;;  %v5390_v48 = vld [vmem:[%s6397_s9 + $0x8a0] ss:$8 sps:$4 sm:$0xff]   ;;  %v5391_v50 = vld [vmem:[%s6397_s9 + $0xb4] ss:$8 sps:$4 sm:$0xff]  }
  0x63   : > { %3966 = vmatprep.subr.bf16.mxu0 %v5351_v17  ;;  %v5393_v51 = vld [vmem:[%s6397_s9 + $0x8b4] ss:$8 sps:$4 sm:$0xff]   ;;  %v5395_v53 = vld [vmem:[%s6397_s9 + $0xb0] ss:$8 sps:$4 sm:$0xff]   ;;  %v5397_v57 = vld [vmem:[%s6397_s9 + $0xc4] ss:$8 sps:$4 sm:$0xff]  }
  0x64   : > { %v6456_v49 = vsub.s32 %v845_v42, %v6448_v43  ;;  %v6463_v52 = vld [vmem:[%s7131_s0] sm:$0xff]  ;;  %v5396_v55 = vld [vmem:[%s6397_s9 + $0x8b0] ss:$8 sps:$4 sm:$0xff]   ;;  %v5399_v58 = vld [vmem:[%s6397_s9 + $0x8c4] ss:$8 sps:$4 sm:$0xff]   ;;  %s7152_s28 = smov (!%p306_p7, %s4644_s28), 63 }
  0x65   : > { %3639 = vmatpush1.bf16.msra.mxu1 %v5353_v18  ;;  %v6472_v56 = vld [vmem:[%s7131_s0 + $0x10] sm:$0xff]  ;;  %v5401_v63 = vld [vmem:[%s6397_s9 + $0xc0] ss:$8 sps:$4 sm:$0xff]   ;;  %v5403_v1 = vld [vmem:[%s6397_s9 + $0xd4] ss:$8 sps:$4 sm:$0xff]   ;;  %s4645_s8 = sshll.u32 %s7152_s28, 2 }
  0x66   : > { %3967 = vmatpush1.bf16.msra.mxu0 %v5354_v19  ;;  %3640 = vmatprep.subr.bf16.mxu1 %v5355_v20  ;;  %v849_v54 = vrot.slane %v6463_v52, %v6456_v49  ;;  %v947_v60 = vrot.slane %v6472_v56, %v6456_v49  ;;  %v5402_v0 = vld [vmem:[%s6397_s9 + $0x8c0] ss:$8 sps:$4 sm:$0xff]   ;;  %v5405_v2 = vld [vmem:[%s6397_s9 + $0x8d4] ss:$8 sps:$4 sm:$0xff]   ;;  %v5407_v4 = vld [vmem:[%s6397_s9 + $0xd0] ss:$8 sps:$4 sm:$0xff]   ;;  %s6954_s15 = scalar_lea.vmem %s7134_s3, %s4645_s8 }
  0x67   : > { %3968 = vmatprep.subr.bf16.mxu0 %v5357_v21  ;;  %v5408_v5 = vld [vmem:[%s6397_s9 + $0x8d0] ss:$8 sps:$4 sm:$0xff]   ;;  %v5409_v6 = vld [vmem:[%s6397_s9 + $0xe4] ss:$8 sps:$4 sm:$0xff]   ;;  %v5413_v8 = vld [vmem:[%s6397_s9 + $0xe0] ss:$8 sps:$4 sm:$0xff]  }
  0x68   : > { %v857_v59 = vcombine.high %v849_v54, %v849_v54  ;;  %v955_v62 = vcombine.high %v947_v60, %v947_v60  ;;  %v5411_v7 = vld [vmem:[%s6397_s9 + $0x8e4] ss:$8 sps:$4 sm:$0xff]   ;;  %v5414_v9 = vld [vmem:[%s6397_s9 + $0x8e0] ss:$8 sps:$4 sm:$0xff]   ;;  %v5415_v10 = vld [vmem:[%s6397_s9 + $0xf4] ss:$8 sps:$4 sm:$0xff]   ;;  %v6497_v16 = vrot.slane %v849_v54, %v6456_v49  ;;  %v6500_v17 = vrot.slane %v947_v60, %v6456_v49 }
  0x69   : > { %3641 = vmatpush1.bf16.msra.mxu1 %v5359_v22  ;;  %v5417_v11 = vld [vmem:[%s6397_s9 + $0x8f4] ss:$8 sps:$4 sm:$0xff]   ;;  %v5419_v12 = vld [vmem:[%s6397_s9 + $0xf0] ss:$8 sps:$4 sm:$0xff]   ;;  %v5424_v14 = vld [vmem:[%s6397_s9 + $0x104] ss:$8 sps:$4 sm:$0xff]  }
  0x6a   : > { %3969 = vmatpush1.bf16.msra.mxu0 %v5360_v23  ;;  %3642 = vmatprep.subr.bf16.mxu1 %v5361_v24  ;;  %v879_v61 = vrot.slane %v857_v59, %v6456_v49  ;;  %v977_v3 = vrot.slane %v955_v62, %v6456_v49  ;;  %v5420_v13 = vld [vmem:[%s6397_s9 + $0x8f0] ss:$8 sps:$4 sm:$0xff]   ;;  %v5428_v15 = vld [vmem:[%s6397_s9 + $0x904] ss:$8 sps:$4 sm:$0xff]   ;;  %v5422_v18 = vld [vmem:[%s6397_s9 + $0x100] ss:$8 sps:$4 sm:$0xff]  }
  0x6b   : > { %3970 = vmatprep.subr.bf16.mxu0 %v5363_v25  ;;  %v5426_v19 = vld [vmem:[%s6397_s9 + $0x900] ss:$8 sps:$4 sm:$0xff]   ;;  %v5431_v20 = vld [vmem:[%s6397_s9 + $0x114] ss:$8 sps:$4 sm:$0xff]   ;;  %v5429_v24 = vld [vmem:[%s6397_s9 + $0x110] ss:$8 sps:$4 sm:$0xff]  }
  0x6c   : > { %3662 = vmatprep.mubr.bf16.mxu1 %v879_v61  ;;  %3990 = vmatprep.mubr.bf16.mxu0 %v977_v3  ;;  %v5434_v21 = vld [vmem:[%s6397_s9 + $0x914] ss:$8 sps:$4 sm:$0xff]   ;;  %v889_v22 = vcombine.high %v879_v61, %v879_v61  ;;  %v987_v23 = vcombine.high %v977_v3, %v977_v3  ;;  %v5432_v25 = vld [vmem:[%s6397_s9 + $0x910] ss:$8 sps:$4 sm:$0xff]   ;;  %v5447_v36 = vld [vmem:[%s6397_s9 + $0x140] ss:$8 sps:$4 sm:$0xff]  }
  0x6d   : > { %3643 = vmatpush1.bf16.msra.mxu1 %v5365_v26  ;;  %v5437_v26 = vld [vmem:[%s6397_s9 + $0x124] ss:$8 sps:$4 sm:$0xff]   ;;  %v5450_v37 = vld [vmem:[%s6397_s9 + $0x940] ss:$8 sps:$4 sm:$0xff]   ;;  %v5455_v38 = vld [vmem:[%s6397_s9 + $0x154] ss:$8 sps:$4 sm:$0xff]  }
  0x6e   : > { %3971 = vmatpush1.bf16.msra.mxu0 %v5366_v27  ;;  %3644 = vmatprep.subr.bf16.mxu1 %v5367_v28  ;;  %v5440_v27 = vld [vmem:[%s6397_s9 + $0x924] ss:$8 sps:$4 sm:$0xff]   ;;  %v5435_v28 = vld [vmem:[%s6397_s9 + $0x120] ss:$8 sps:$4 sm:$0xff]   ;;  %v5482_v59 = vld [vmem:[%s6397_s9 + $0x994] ss:$8 sps:$4 sm:$0xff]  }
  0x6f   : > { %3972 = vmatprep.subr.bf16.mxu0 %v5369_v29  ;;  %v5438_v29 = vld [vmem:[%s6397_s9 + $0x920] ss:$8 sps:$4 sm:$0xff]   ;;  %v5461_v42 = vld [vmem:[%s6397_s9 + $0x164] ss:$8 sps:$4 sm:$0xff]   ;;  %v5477_v60 = vld [vmem:[%s6397_s9 + $0x190] ss:$8 sps:$4 sm:$0xff]  }
  0x70   : > { %v5476_v54 = vld [vmem:[%s6397_s9 + $0x984] ss:$8 sps:$4 sm:$0xff]   ;;  %v5480_v61 = vld [vmem:[%s6397_s9 + $0x990] ss:$8 sps:$4 sm:$0xff]   ;;  %v5494_v3 = vld [vmem:[%s6397_s9 + $0x9b4] ss:$8 sps:$4 sm:$0xff]  }
  0x71   : > { %3645 = vmatpush1.bf16.msra.mxu1 %v5371_v30  ;;  %v5443_v30 = vld [vmem:[%s6397_s9 + $0x134] ss:$8 sps:$4 sm:$0xff]   ;;  %v5485_v62 = vld [vmem:[%s6397_s9 + $0x1a4] ss:$8 sps:$4 sm:$0xff]   ;;  %p311_p9 = scmp.lt.s32.totalorder %s6219_s18, 1  ;;  %vm4505_vm0 = vcmask 74752  }
  0x72   : > { %3973 = vmatpush1.bf16.msra.mxu0 %v5372_v31  ;;  %3646 = vmatprep.subr.bf16.mxu1 %v5373_v32  ;;  %v5446_v31 = vld [vmem:[%s6397_s9 + $0x934] ss:$8 sps:$4 sm:$0xff]   ;;  %v5441_v32 = vld [vmem:[%s6397_s9 + $0x130] ss:$8 sps:$4 sm:$0xff]  }
  0x73   : > { %3974 = vmatprep.subr.bf16.mxu0 %v5375_v33  ;;  %v5444_v33 = vld [vmem:[%s6397_s9 + $0x930] ss:$8 sps:$4 sm:$0xff]   ;;  %s7154_s18 = smov (!%p311_p9, %s6219_s18), 1 }
  0x74   : > { %s4646_s21 = sshll.u32 %s7154_s18, 1 }
  0x75   : > { %3647 = vmatpush1.bf16.msra.mxu1 %v5377_v34  ;;  %v5449_v34 = vld [vmem:[%s6397_s9 + $0x144] ss:$8 sps:$4 sm:$0xff]   ;;  %s314_s11 = scalar_lea.vmem %s7135_s4, %s4646_s21 }
  0x76   : > { %3975 = vmatpush1.bf16.msra.mxu0 %v5378_v35  ;;  %3648 = vmatprep.subr.bf16.mxu1 %v5379_v39  ;;  %v5452_v35 = vld [vmem:[%s6397_s9 + $0x944] ss:$8 sps:$4 sm:$0xff]   ;;  %v5458_v39 = vld [vmem:[%s6397_s9 + $0x954] ss:$8 sps:$4 sm:$0xff]  }
  0x77   : > { %3976 = vmatprep.subr.bf16.mxu0 %v5381_v40  ;;  %v5453_v40 = vld [vmem:[%s6397_s9 + $0x150] ss:$8 sps:$4 sm:$0xff]  }
  0x79   : > { %3649 = vmatpush1.bf16.msra.mxu1 %v5383_v41  ;;  %v5456_v41 = vld [vmem:[%s6397_s9 + $0x950] ss:$8 sps:$4 sm:$0xff]  }
  0x7a   : > { %3977 = vmatpush1.bf16.msra.mxu0 %v5384_v44  ;;  %3650 = vmatprep.subr.bf16.mxu1 %v5385_v45  ;;  %v5464_v44 = vld [vmem:[%s6397_s9 + $0x964] ss:$8 sps:$4 sm:$0xff]   ;;  %v5459_v45 = vld [vmem:[%s6397_s9 + $0x160] ss:$8 sps:$4 sm:$0xff]  }
  0x7b   : > { %3978 = vmatprep.subr.bf16.mxu0 %v5387_v46  ;;  %v5462_v46 = vld [vmem:[%s6397_s9 + $0x960] ss:$8 sps:$4 sm:$0xff]  }
  0x7d   : > { %3651 = vmatpush1.bf16.msra.mxu1 %v5389_v47  ;;  %v5467_v47 = vld [vmem:[%s6397_s9 + $0x174] ss:$8 sps:$4 sm:$0xff]  }
  0x7e   : > { %3979 = vmatpush1.bf16.msra.mxu0 %v5390_v48  ;;  %3652 = vmatprep.subr.bf16.mxu1 %v5391_v50  ;;  %v5470_v48 = vld [vmem:[%s6397_s9 + $0x974] ss:$8 sps:$4 sm:$0xff]   ;;  %v5465_v50 = vld [vmem:[%s6397_s9 + $0x170] ss:$8 sps:$4 sm:$0xff]  }
  0x7f   : > { %3980 = vmatprep.subr.bf16.mxu0 %v5393_v51  ;;  %v5468_v51 = vld [vmem:[%s6397_s9 + $0x970] ss:$8 sps:$4 sm:$0xff]  }
  0x81   : > { %3653 = vmatpush1.bf16.msra.mxu1 %v5395_v53  ;;  %v5473_v53 = vld [vmem:[%s6397_s9 + $0x184] ss:$8 sps:$4 sm:$0xff]  }
  0x82   : > { %3981 = vmatpush1.bf16.msra.mxu0 %v5396_v55  ;;  %3654 = vmatprep.subr.bf16.mxu1 %v5397_v57  ;;  %v5471_v55 = vld [vmem:[%s6397_s9 + $0x180] ss:$8 sps:$4 sm:$0xff]  }
  0x83   : > { %3982 = vmatprep.subr.bf16.mxu0 %v5399_v58  ;;  %v5474_v57 = vld [vmem:[%s6397_s9 + $0x980] ss:$8 sps:$4 sm:$0xff]   ;;  %v5479_v58 = vld [vmem:[%s6397_s9 + $0x194] ss:$8 sps:$4 sm:$0xff]  }
  0x85   : > { %3655 = vmatpush1.bf16.msra.mxu1 %v5401_v63  ;;  %v5488_v63 = vld [vmem:[%s6397_s9 + $0x9a4] ss:$8 sps:$4 sm:$0xff]  }
  0x86   : > { %3983 = vmatpush1.bf16.msra.mxu0 %v5402_v0  ;;  %3656 = vmatprep.subr.bf16.mxu1 %v5403_v1  ;;  %v5483_v0 = vld [vmem:[%s6397_s9 + $0x1a0] ss:$8 sps:$4 sm:$0xff]  }
  0x87   : > { %3984 = vmatprep.subr.bf16.mxu0 %v5405_v2  ;;  %v5486_v1 = vld [vmem:[%s6397_s9 + $0x9a0] ss:$8 sps:$4 sm:$0xff]   ;;  %v5491_v2 = vld [vmem:[%s6397_s9 + $0x1b4] ss:$8 sps:$4 sm:$0xff]  }
  0x89   : > { %3657 = vmatpush1.bf16.msra.mxu1 %v5407_v4  ;;  %v5489_v4 = vld [vmem:[%s6397_s9 + $0x1b0] ss:$8 sps:$4 sm:$0xff]  }
  0x8a   : > { %3985 = vmatpush1.bf16.msra.mxu0 %v5408_v5  ;;  %3658 = vmatprep.subr.bf16.mxu1 %v5409_v6  ;;  %v5492_v5 = vld [vmem:[%s6397_s9 + $0x9b0] ss:$8 sps:$4 sm:$0xff]   ;;  %v5497_v6 = vld [vmem:[%s6397_s9 + $0x1c4] ss:$8 sps:$4 sm:$0xff]  }
  0x8b   : > { %3986 = vmatprep.subr.bf16.mxu0 %v5411_v7  ;;  %v5500_v7 = vld [vmem:[%s6397_s9 + $0x9c4] ss:$8 sps:$4 sm:$0xff]  }
  0x8d   : > { %3659 = vmatpush1.bf16.msra.mxu1 %v5413_v8  ;;  %v5495_v8 = vld [vmem:[%s6397_s9 + $0x1c0] ss:$8 sps:$4 sm:$0xff]  }
  0x8e   : > { %3987 = vmatpush1.bf16.msra.mxu0 %v5414_v9  ;;  %3660 = vmatprep.subr.bf16.mxu1 %v5415_v10  ;;  %v5498_v9 = vld [vmem:[%s6397_s9 + $0x9c0] ss:$8 sps:$4 sm:$0xff]   ;;  %v5503_v10 = vld [vmem:[%s6397_s9 + $0x1d4] ss:$8 sps:$4 sm:$0xff]  }
  0x8f   : > { %3988 = vmatprep.subr.bf16.mxu0 %v5417_v11  ;;  %v5506_v11 = vld [vmem:[%s6397_s9 + $0x9d4] ss:$8 sps:$4 sm:$0xff]  }
  0x91   : > { %3661 = vmatpush1.bf16.msra.mxu1 %v5419_v12  ;;  %v5501_v12 = vld [vmem:[%s6397_s9 + $0x1d0] ss:$8 sps:$4 sm:$0xff]  }
  0x92   : > { %3989 = vmatpush1.bf16.msra.mxu0 %v5420_v13  ;;  %3671 = vmatprep.subr.bf16.mxu1 %v5424_v14  ;;  %v5504_v13 = vld [vmem:[%s6397_s9 + $0x9d0] ss:$8 sps:$4 sm:$0xff]   ;;  %v5509_v14 = vld [vmem:[%s6397_s9 + $0x1e4] ss:$8 sps:$4 sm:$0xff]  }
  0x93   : > { %3999 = vmatprep.subr.bf16.mxu0 %v5428_v15  ;;  %v5512_v15 = vld [vmem:[%s6397_s9 + $0x9e4] ss:$8 sps:$4 sm:$0xff]  }
  0x94   : > { %3663 = vmatmul.mubr.bf16.vlgmr.msra.gmra.mrb[0].mxu1 %v6497_v16 }
  0x95   : > { %3991 = vmatmul.mubr.bf16.vlgmr.msra.gmra.mrb[0].mxu0 %v6500_v17  ;;  %3672 = vmatpush1.bf16.msra.mxu1 %v5422_v18  ;;  %v842_v18 = vcombine.high %v6463_v52, %v6463_v52  ;;  %v5513_v52 = vld [vmem:[%s6397_s9 + $0x1f0] ss:$8 sps:$4 sm:$0xff]  }
  0x96   : > { %4000 = vmatpush1.bf16.msra.mxu0 %v5426_v19  ;;  %3673 = vmatprep.subr.bf16.mxu1 %v5431_v20  ;;  %v940_v19 = vcombine.high %v6472_v56, %v6472_v56  ;;  %v5507_v20 = vld [vmem:[%s6397_s9 + $0x1e0] ss:$8 sps:$4 sm:$0xff]   ;;  %v5516_v56 = vld [vmem:[%s6397_s9 + $0x9f0] ss:$8 sps:$4 sm:$0xff]  }
  0x97   : > { %4001 = vmatprep.subr.bf16.mxu0 %v5434_v21  ;;  %3703 = vmatprep.mubr.bf16.mxu1 %v889_v22  ;;  %v5510_v21 = vld [vmem:[%s6397_s9 + $0x9e0] ss:$8 sps:$4 sm:$0xff]   ;;  %v5515_v22 = vld [vmem:[%s6397_s9 + $0x1f4] ss:$8 sps:$4 sm:$0xff]  }
  0x98   : > { %4031 = vmatprep.mubr.bf16.mxu0 %v987_v23  ;;  %v5518_v23 = vld [vmem:[%s6397_s9 + $0x9f4] ss:$8 sps:$4 sm:$0xff]  }
  0x99   : > { %3674 = vmatpush1.bf16.msra.mxu1 %v5429_v24  ;;  %v6569_v24 = vrot.slane %v842_v18, %v6456_v49  ;;  %v5585_v18 = vld [vmem:[%s6397_s9 + $0x2b0] ss:$8 sps:$4 sm:$0xff]  }
  0x9a   : > { %4002 = vmatpush1.bf16.msra.mxu0 %v5432_v25  ;;  %3675 = vmatprep.subr.bf16.mxu1 %v5437_v26  ;;  %v6572_v25 = vrot.slane %v940_v19, %v6456_v49  ;;  %v5521_v26 = vld [vmem:[%s6397_s9 + $0x204] ss:$8 sps:$4 sm:$0xff]   ;;  %v5588_v19 = vld [vmem:[%s6397_s9 + $0xab0] ss:$8 sps:$4 sm:$0xff]  }
  0x9b   : > { %4003 = vmatprep.subr.bf16.mxu0 %v5440_v27  ;;  %v5524_v27 = vld [vmem:[%s6397_s9 + $0xa04] ss:$8 sps:$4 sm:$0xff]  }
  0x9d   : > { %3676 = vmatpush1.bf16.msra.mxu1 %v5435_v28  ;;  %v858_v28 = vcombine.high %v6569_v24, %v6569_v24 }
  0x9e   : > { %4004 = vmatpush1.bf16.msra.mxu0 %v5438_v29  ;;  %3677 = vmatprep.subr.bf16.mxu1 %v5443_v30  ;;  %v956_v29 = vcombine.high %v6572_v25, %v6572_v25  ;;  %v887_v30 = vcombine.high %v6497_v16, %v6497_v16 }
  0x9f   : > { %4005 = vmatprep.subr.bf16.mxu0 %v5446_v31  ;;  %v985_v31 = vcombine.high %v6500_v17, %v6500_v17  ;;  %v5525_v17 = vld [vmem:[%s6397_s9 + $0x210] ss:$8 sps:$4 sm:$0xff]  }
  0xa0   : > { %v6594_v16 = vrot.slane %v956_v29, %v6456_v49  ;;  %v5608_v29 = vld [vmem:[%s6397_s9 + $0xae4] ss:$8 sps:$4 sm:$0xff]  }
  0xa1   : > { %3678 = vmatpush1.bf16.msra.mxu1 %v5441_v32  ;;  %v5519_v32 = vld [vmem:[%s6397_s9 + $0x200] ss:$8 sps:$4 sm:$0xff]  }
  0xa2   : > { %4006 = vmatpush1.bf16.msra.mxu0 %v5444_v33  ;;  %3679 = vmatprep.subr.bf16.mxu1 %v5449_v34  ;;  %v5522_v33 = vld [vmem:[%s6397_s9 + $0xa00] ss:$8 sps:$4 sm:$0xff]   ;;  %v5527_v34 = vld [vmem:[%s6397_s9 + $0x214] ss:$8 sps:$4 sm:$0xff]  }
  0xa3   : > { %4007 = vmatprep.subr.bf16.mxu0 %v5452_v35  ;;  %v5530_v35 = vld [vmem:[%s6397_s9 + $0xa14] ss:$8 sps:$4 sm:$0xff]  }
  0xa5   : > { %3680 = vmatpush1.bf16.msra.mxu1 %v5447_v36  ;;  %v6591_v36 = vrot.slane %v858_v28, %v6456_v49  ;;  %v5605_v28 = vld [vmem:[%s6397_s9 + $0x2e4] ss:$8 sps:$4 sm:$0xff]  }
  0xa6   : > { %4008 = vmatpush1.bf16.msra.mxu0 %v5450_v37  ;;  %3681 = vmatprep.subr.bf16.mxu1 %v5455_v38  ;;  %v5528_v37 = vld [vmem:[%s6397_s9 + $0xa10] ss:$8 sps:$4 sm:$0xff]   ;;  %v5533_v38 = vld [vmem:[%s6397_s9 + $0x224] ss:$8 sps:$4 sm:$0xff]  }
  0xa7   : > { %4009 = vmatprep.subr.bf16.mxu0 %v5458_v39  ;;  %v5536_v39 = vld [vmem:[%s6397_s9 + $0xa24] ss:$8 sps:$4 sm:$0xff]  }
  0xa9   : > { %3682 = vmatpush1.bf16.msra.mxu1 %v5453_v40  ;;  %v5531_v40 = vld [vmem:[%s6397_s9 + $0x220] ss:$8 sps:$4 sm:$0xff]  }
  0xaa   : > { %4010 = vmatpush1.bf16.msra.mxu0 %v5456_v41  ;;  %3683 = vmatprep.subr.bf16.mxu1 %v5461_v42  ;;  %v5534_v41 = vld [vmem:[%s6397_s9 + $0xa20] ss:$8 sps:$4 sm:$0xff]   ;;  %v5539_v42 = vld [vmem:[%s6397_s9 + $0x234] ss:$8 sps:$4 sm:$0xff]  }
  0xab   : > { %4011 = vmatprep.subr.bf16.mxu0 %v5464_v44  ;;  %v5542_v44 = vld [vmem:[%s6397_s9 + $0xa34] ss:$8 sps:$4 sm:$0xff]  }
  0xad   : > { %3684 = vmatpush1.bf16.msra.mxu1 %v5459_v45  ;;  %v5537_v45 = vld [vmem:[%s6397_s9 + $0x230] ss:$8 sps:$4 sm:$0xff]  }
  0xae   : > { %4012 = vmatpush1.bf16.msra.mxu0 %v5462_v46  ;;  %3685 = vmatprep.subr.bf16.mxu1 %v5467_v47  ;;  %v5540_v46 = vld [vmem:[%s6397_s9 + $0xa30] ss:$8 sps:$4 sm:$0xff]   ;;  %v5545_v47 = vld [vmem:[%s6397_s9 + $0x244] ss:$8 sps:$4 sm:$0xff]  }
  0xaf   : > { %4013 = vmatprep.subr.bf16.mxu0 %v5470_v48  ;;  %v5548_v48 = vld [vmem:[%s6397_s9 + $0xa44] ss:$8 sps:$4 sm:$0xff]  }
  0xb1   : > { %3686 = vmatpush1.bf16.msra.mxu1 %v5465_v50  ;;  %v5543_v50 = vld [vmem:[%s6397_s9 + $0x240] ss:$8 sps:$4 sm:$0xff]  }
  0xb2   : > { %4014 = vmatpush1.bf16.msra.mxu0 %v5468_v51  ;;  %3687 = vmatprep.subr.bf16.mxu1 %v5473_v53  ;;  %v5546_v51 = vld [vmem:[%s6397_s9 + $0xa40] ss:$8 sps:$4 sm:$0xff]   ;;  %v5551_v53 = vld [vmem:[%s6397_s9 + $0x254] ss:$8 sps:$4 sm:$0xff]  }
  0xb3   : > { %4015 = vmatprep.subr.bf16.mxu0 %v5476_v54  ;;  %v5554_v54 = vld [vmem:[%s6397_s9 + $0xa54] ss:$8 sps:$4 sm:$0xff]  }
  0xb5   : > { %3688 = vmatpush1.bf16.msra.mxu1 %v5471_v55  ;;  %v5549_v55 = vld [vmem:[%s6397_s9 + $0x250] ss:$8 sps:$4 sm:$0xff]  }
  0xb6   : > { %4016 = vmatpush1.bf16.msra.mxu0 %v5474_v57  ;;  %3689 = vmatprep.subr.bf16.mxu1 %v5479_v58  ;;  %v5552_v57 = vld [vmem:[%s6397_s9 + $0xa50] ss:$8 sps:$4 sm:$0xff]   ;;  %v5557_v58 = vld [vmem:[%s6397_s9 + $0x264] ss:$8 sps:$4 sm:$0xff]  }
  0xb7   : > { %4017 = vmatprep.subr.bf16.mxu0 %v5482_v59  ;;  %v5560_v59 = vld [vmem:[%s6397_s9 + $0xa64] ss:$8 sps:$4 sm:$0xff]  }
  0xb9   : > { %3690 = vmatpush1.bf16.msra.mxu1 %v5477_v60  ;;  %v5555_v60 = vld [vmem:[%s6397_s9 + $0x260] ss:$8 sps:$4 sm:$0xff]  }
  0xba   : > { %4018 = vmatpush1.bf16.msra.mxu0 %v5480_v61  ;;  %3691 = vmatprep.subr.bf16.mxu1 %v5485_v62  ;;  %v5558_v61 = vld [vmem:[%s6397_s9 + $0xa60] ss:$8 sps:$4 sm:$0xff]   ;;  %v5563_v62 = vld [vmem:[%s6397_s9 + $0x274] ss:$8 sps:$4 sm:$0xff]  }
  0xbb   : > { %4019 = vmatprep.subr.bf16.mxu0 %v5488_v63  ;;  %v5566_v63 = vld [vmem:[%s6397_s9 + $0xa74] ss:$8 sps:$4 sm:$0xff]  }
  0xbd   : > { %3692 = vmatpush1.bf16.msra.mxu1 %v5483_v0  ;;  %v5561_v0 = vld [vmem:[%s6397_s9 + $0x270] ss:$8 sps:$4 sm:$0xff]  }
  0xbe   : > { %4020 = vmatpush1.bf16.msra.mxu0 %v5486_v1  ;;  %3693 = vmatprep.subr.bf16.mxu1 %v5491_v2  ;;  %v5564_v1 = vld [vmem:[%s6397_s9 + $0xa70] ss:$8 sps:$4 sm:$0xff]   ;;  %v5569_v2 = vld [vmem:[%s6397_s9 + $0x284] ss:$8 sps:$4 sm:$0xff]  }
  0xbf   : > { %4021 = vmatprep.subr.bf16.mxu0 %v5494_v3  ;;  %v5572_v3 = vld [vmem:[%s6397_s9 + $0xa84] ss:$8 sps:$4 sm:$0xff]  }
  0xc1   : > { %3694 = vmatpush1.bf16.msra.mxu1 %v5489_v4  ;;  %v5567_v4 = vld [vmem:[%s6397_s9 + $0x280] ss:$8 sps:$4 sm:$0xff]  }
  0xc2   : > { %4022 = vmatpush1.bf16.msra.mxu0 %v5492_v5  ;;  %3695 = vmatprep.subr.bf16.mxu1 %v5497_v6  ;;  %v5570_v5 = vld [vmem:[%s6397_s9 + $0xa80] ss:$8 sps:$4 sm:$0xff]   ;;  %v5575_v6 = vld [vmem:[%s6397_s9 + $0x294] ss:$8 sps:$4 sm:$0xff]  }
  0xc3   : > { %4023 = vmatprep.subr.bf16.mxu0 %v5500_v7  ;;  %v5578_v7 = vld [vmem:[%s6397_s9 + $0xa94] ss:$8 sps:$4 sm:$0xff]  }
  0xc5   : > { %3696 = vmatpush1.bf16.msra.mxu1 %v5495_v8  ;;  %v5573_v8 = vld [vmem:[%s6397_s9 + $0x290] ss:$8 sps:$4 sm:$0xff]  }
  0xc6   : > { %4024 = vmatpush1.bf16.msra.mxu0 %v5498_v9  ;;  %3697 = vmatprep.subr.bf16.mxu1 %v5503_v10  ;;  %v5576_v9 = vld [vmem:[%s6397_s9 + $0xa90] ss:$8 sps:$4 sm:$0xff]   ;;  %v5581_v10 = vld [vmem:[%s6397_s9 + $0x2a4] ss:$8 sps:$4 sm:$0xff]  }
  0xc7   : > { %4025 = vmatprep.subr.bf16.mxu0 %v5506_v11  ;;  %v5584_v11 = vld [vmem:[%s6397_s9 + $0xaa4] ss:$8 sps:$4 sm:$0xff]  }
  0xc9   : > { %3698 = vmatpush1.bf16.msra.mxu1 %v5501_v12  ;;  %v5579_v12 = vld [vmem:[%s6397_s9 + $0x2a0] ss:$8 sps:$4 sm:$0xff]  }
  0xca   : > { %4026 = vmatpush1.bf16.msra.mxu0 %v5504_v13  ;;  %3699 = vmatprep.subr.bf16.mxu1 %v5509_v14  ;;  %v5582_v13 = vld [vmem:[%s6397_s9 + $0xaa0] ss:$8 sps:$4 sm:$0xff]   ;;  %v5587_v14 = vld [vmem:[%s6397_s9 + $0x2b4] ss:$8 sps:$4 sm:$0xff]  }
  0xcb   : > { %4027 = vmatprep.subr.bf16.mxu0 %v5512_v15  ;;  %v5590_v15 = vld [vmem:[%s6397_s9 + $0xab4] ss:$8 sps:$4 sm:$0xff]  }
  0xcd   : > { %3700 = vmatpush1.bf16.msra.mxu1 %v5507_v20  ;;  %v5593_v20 = vld [vmem:[%s6397_s9 + $0x2c4] ss:$8 sps:$4 sm:$0xff]  }
  0xce   : > { %4028 = vmatpush1.bf16.msra.mxu0 %v5510_v21  ;;  %3701 = vmatprep.subr.bf16.mxu1 %v5515_v22  ;;  %v5596_v21 = vld [vmem:[%s6397_s9 + $0xac4] ss:$8 sps:$4 sm:$0xff]   ;;  %v5591_v22 = vld [vmem:[%s6397_s9 + $0x2c0] ss:$8 sps:$4 sm:$0xff]  }
  0xcf   : > { %4029 = vmatprep.subr.bf16.mxu0 %v5518_v23  ;;  %v5594_v23 = vld [vmem:[%s6397_s9 + $0xac0] ss:$8 sps:$4 sm:$0xff]  }
  0xd1   : > { %3702 = vmatpush1.bf16.msra.mxu1 %v5513_v52  ;;  %v5599_v52 = vld [vmem:[%s6397_s9 + $0x2d4] ss:$8 sps:$4 sm:$0xff]  }
  0xd2   : > { %4030 = vmatpush1.bf16.msra.mxu0 %v5516_v56  ;;  %3712 = vmatprep.subr.bf16.mxu1 %v5521_v26  ;;  %v5602_v56 = vld [vmem:[%s6397_s9 + $0xad4] ss:$8 sps:$4 sm:$0xff]   ;;  %v5597_v26 = vld [vmem:[%s6397_s9 + $0x2d0] ss:$8 sps:$4 sm:$0xff]  }
  0xd3   : > { %4040 = vmatprep.subr.bf16.mxu0 %v5524_v27  ;;  %v5600_v27 = vld [vmem:[%s6397_s9 + $0xad0] ss:$8 sps:$4 sm:$0xff]  }
  0xd4   : > { %3704 = vmatmul.mubr.bf16.vlgmr.msra.gmra.mrb[0].mxu1 %v887_v30  ;;  %v5603_v30 = vld [vmem:[%s6397_s9 + $0x2e0] ss:$8 sps:$4 sm:$0xff]  }
  0xd5   : > { %4032 = vmatmul.mubr.bf16.vlgmr.msra.gmra.mrb[0].mxu0 %v985_v31  ;;  %3713 = vmatpush1.bf16.msra.mxu1 %v5519_v32  ;;  %v5606_v31 = vld [vmem:[%s6397_s9 + $0xae0] ss:$8 sps:$4 sm:$0xff]   ;;  %v5611_v32 = vld [vmem:[%s6397_s9 + $0x2f4] ss:$8 sps:$4 sm:$0xff]  }
  0xd6   : > { %4041 = vmatpush1.bf16.msra.mxu0 %v5522_v33  ;;  %3714 = vmatprep.subr.bf16.mxu1 %v5527_v34  ;;  %v5614_v33 = vld [vmem:[%s6397_s9 + $0xaf4] ss:$8 sps:$4 sm:$0xff]   ;;  %v5609_v34 = vld [vmem:[%s6397_s9 + $0x2f0] ss:$8 sps:$4 sm:$0xff]  }
  0xd7   : > { %4042 = vmatprep.subr.bf16.mxu0 %v5530_v35  ;;  %3744 = vmatprep.mubr.bf16.mxu1 %v6591_v36  ;;  %v5612_v35 = vld [vmem:[%s6397_s9 + $0xaf0] ss:$8 sps:$4 sm:$0xff]  }
  0xd8   : > { %4072 = vmatprep.mubr.bf16.mxu0 %v6594_v16 }
  0xd9   : > { %3715 = vmatpush1.bf16.msra.mxu1 %v5525_v17  ;;  %v5617_v17 = vld [vmem:[%s6397_s9 + $0x304] ss:$8 sps:$4 sm:$0xff]  }
  0xda   : > { %4043 = vmatpush1.bf16.msra.mxu0 %v5528_v37  ;;  %3716 = vmatprep.subr.bf16.mxu1 %v5533_v38  ;;  %v5620_v37 = vld [vmem:[%s6397_s9 + $0xb04] ss:$8 sps:$4 sm:$0xff]   ;;  %v6660_v38 = vrot.slane %v6569_v24, %v6456_v49  ;;  %v890_v24 = vcombine.high %v6591_v36, %v6591_v36 }
  0xdb   : > { %4044 = vmatprep.subr.bf16.mxu0 %v5536_v39  ;;  %v6664_v39 = vrot.slane %v6572_v25, %v6456_v49  ;;  %v5621_v25 = vld [vmem:[%s6397_s9 + $0x310] ss:$8 sps:$4 sm:$0xff]   ;;  %v5629_v36 = vld [vmem:[%s6397_s9 + $0x324] ss:$8 sps:$4 sm:$0xff]  }
  0xdd   : > { %3717 = vmatpush1.bf16.msra.mxu1 %v5531_v40  ;;  %v5615_v40 = vld [vmem:[%s6397_s9 + $0x300] ss:$8 sps:$4 sm:$0xff]  }
  0xde   : > { %4045 = vmatpush1.bf16.msra.mxu0 %v5534_v41  ;;  %3718 = vmatprep.subr.bf16.mxu1 %v5539_v42  ;;  %v5618_v41 = vld [vmem:[%s6397_s9 + $0xb00] ss:$8 sps:$4 sm:$0xff]   ;;  %v5623_v42 = vld [vmem:[%s6397_s9 + $0x314] ss:$8 sps:$4 sm:$0xff]  }
  0xdf   : > { %4046 = vmatprep.subr.bf16.mxu0 %v5542_v44  ;;  %v5626_v44 = vld [vmem:[%s6397_s9 + $0xb14] ss:$8 sps:$4 sm:$0xff]  }
  0xe1   : > { %3719 = vmatpush1.bf16.msra.mxu1 %v5537_v45  ;;  %v988_v45 = vcombine.high %v6594_v16, %v6594_v16  ;;  %v5627_v16 = vld [vmem:[%s6397_s9 + $0x320] ss:$8 sps:$4 sm:$0xff]  }
  0xe2   : > { %4047 = vmatpush1.bf16.msra.mxu0 %v5540_v46  ;;  %3720 = vmatprep.subr.bf16.mxu1 %v5545_v47  ;;  %v5624_v46 = vld [vmem:[%s6397_s9 + $0xb10] ss:$8 sps:$4 sm:$0xff]   ;;  %v5632_v47 = vld [vmem:[%s6397_s9 + $0xb24] ss:$8 sps:$4 sm:$0xff]  }
  0xe3   : > { %4048 = vmatprep.subr.bf16.mxu0 %v5548_v48  ;;  %v5630_v48 = vld [vmem:[%s6397_s9 + $0xb20] ss:$8 sps:$4 sm:$0xff]  }
  0xe5   : > { %3721 = vmatpush1.bf16.msra.mxu1 %v5543_v50  ;;  %v5635_v50 = vld [vmem:[%s6397_s9 + $0x334] ss:$8 sps:$4 sm:$0xff]  }
  0xe6   : > { %4049 = vmatpush1.bf16.msra.mxu0 %v5546_v51  ;;  %3722 = vmatprep.subr.bf16.mxu1 %v5551_v53  ;;  %v5638_v51 = vld [vmem:[%s6397_s9 + $0xb34] ss:$8 sps:$4 sm:$0xff]   ;;  %v5633_v53 = vld [vmem:[%s6397_s9 + $0x330] ss:$8 sps:$4 sm:$0xff]  }
  0xe7   : > { %4050 = vmatprep.subr.bf16.mxu0 %v5554_v54  ;;  %v5636_v54 = vld [vmem:[%s6397_s9 + $0xb30] ss:$8 sps:$4 sm:$0xff]  }
  0xe9   : > { %3723 = vmatpush1.bf16.msra.mxu1 %v5549_v55  ;;  %v5641_v55 = vld [vmem:[%s6397_s9 + $0x344] ss:$8 sps:$4 sm:$0xff]  }
  0xea   : > { %4051 = vmatpush1.bf16.msra.mxu0 %v5552_v57  ;;  %3724 = vmatprep.subr.bf16.mxu1 %v5557_v58  ;;  %v5644_v57 = vld [vmem:[%s6397_s9 + $0xb44] ss:$8 sps:$4 sm:$0xff]   ;;  %v5639_v58 = vld [vmem:[%s6397_s9 + $0x340] ss:$8 sps:$4 sm:$0xff]  }
  0xeb   : > { %4052 = vmatprep.subr.bf16.mxu0 %v5560_v59  ;;  %v5642_v59 = vld [vmem:[%s6397_s9 + $0xb40] ss:$8 sps:$4 sm:$0xff]  }
  0xed   : > { %3725 = vmatpush1.bf16.msra.mxu1 %v5555_v60  ;;  %v5647_v60 = vld [vmem:[%s6397_s9 + $0x354] ss:$8 sps:$4 sm:$0xff]  }
  0xee   : > { %4053 = vmatpush1.bf16.msra.mxu0 %v5558_v61  ;;  %3726 = vmatprep.subr.bf16.mxu1 %v5563_v62  ;;  %v5650_v61 = vld [vmem:[%s6397_s9 + $0xb54] ss:$8 sps:$4 sm:$0xff]   ;;  %v5645_v62 = vld [vmem:[%s6397_s9 + $0x350] ss:$8 sps:$4 sm:$0xff]  }
  0xef   : > { %4054 = vmatprep.subr.bf16.mxu0 %v5566_v63  ;;  %v5648_v63 = vld [vmem:[%s6397_s9 + $0xb50] ss:$8 sps:$4 sm:$0xff]  }
  0xf1   : > { %3727 = vmatpush1.bf16.msra.mxu1 %v5561_v0  ;;  %v5653_v0 = vld [vmem:[%s6397_s9 + $0x364] ss:$8 sps:$4 sm:$0xff]  }
  0xf2   : > { %4055 = vmatpush1.bf16.msra.mxu0 %v5564_v1  ;;  %3728 = vmatprep.subr.bf16.mxu1 %v5569_v2  ;;  %v5656_v1 = vld [vmem:[%s6397_s9 + $0xb64] ss:$8 sps:$4 sm:$0xff]   ;;  %v5651_v2 = vld [vmem:[%s6397_s9 + $0x360] ss:$8 sps:$4 sm:$0xff]  }
  0xf3   : > { %4056 = vmatprep.subr.bf16.mxu0 %v5572_v3  ;;  %v5654_v3 = vld [vmem:[%s6397_s9 + $0xb60] ss:$8 sps:$4 sm:$0xff]  }
  0xf5   : > { %3729 = vmatpush1.bf16.msra.mxu1 %v5567_v4  ;;  %v5659_v4 = vld [vmem:[%s6397_s9 + $0x374] ss:$8 sps:$4 sm:$0xff]  }
  0xf6   : > { %4057 = vmatpush1.bf16.msra.mxu0 %v5570_v5  ;;  %3730 = vmatprep.subr.bf16.mxu1 %v5575_v6  ;;  %v5662_v5 = vld [vmem:[%s6397_s9 + $0xb74] ss:$8 sps:$4 sm:$0xff]   ;;  %v5657_v6 = vld [vmem:[%s6397_s9 + $0x370] ss:$8 sps:$4 sm:$0xff]  }
  0xf7   : > { %4058 = vmatprep.subr.bf16.mxu0 %v5578_v7  ;;  %v5660_v7 = vld [vmem:[%s6397_s9 + $0xb70] ss:$8 sps:$4 sm:$0xff]  }
  0xf9   : > { %3731 = vmatpush1.bf16.msra.mxu1 %v5573_v8  ;;  %v5665_v8 = vld [vmem:[%s6397_s9 + $0x384] ss:$8 sps:$4 sm:$0xff]  }
  0xfa   : > { %4059 = vmatpush1.bf16.msra.mxu0 %v5576_v9  ;;  %3732 = vmatprep.subr.bf16.mxu1 %v5581_v10  ;;  %v5668_v9 = vld [vmem:[%s6397_s9 + $0xb84] ss:$8 sps:$4 sm:$0xff]   ;;  %v5663_v10 = vld [vmem:[%s6397_s9 + $0x380] ss:$8 sps:$4 sm:$0xff]  }
  0xfb   : > { %4060 = vmatprep.subr.bf16.mxu0 %v5584_v11  ;;  %v5666_v11 = vld [vmem:[%s6397_s9 + $0xb80] ss:$8 sps:$4 sm:$0xff]  }
  0xfd   : > { %3733 = vmatpush1.bf16.msra.mxu1 %v5579_v12  ;;  %v5671_v12 = vld [vmem:[%s6397_s9 + $0x394] ss:$8 sps:$4 sm:$0xff]  }
  0xfe   : > { %4061 = vmatpush1.bf16.msra.mxu0 %v5582_v13  ;;  %3734 = vmatprep.subr.bf16.mxu1 %v5587_v14  ;;  %v5674_v13 = vld [vmem:[%s6397_s9 + $0xb94] ss:$8 sps:$4 sm:$0xff]   ;;  %v5669_v14 = vld [vmem:[%s6397_s9 + $0x390] ss:$8 sps:$4 sm:$0xff]  }
  0xff   : > { %4062 = vmatprep.subr.bf16.mxu0 %v5590_v15  ;;  %v5672_v15 = vld [vmem:[%s6397_s9 + $0xb90] ss:$8 sps:$4 sm:$0xff]  }
 0x101   : > { %3735 = vmatpush1.bf16.msra.mxu1 %v5585_v18  ;;  %v5677_v18 = vld [vmem:[%s6397_s9 + $0x3a4] ss:$8 sps:$4 sm:$0xff]  }
 0x102   : > { %4063 = vmatpush1.bf16.msra.mxu0 %v5588_v19  ;;  %3736 = vmatprep.subr.bf16.mxu1 %v5593_v20  ;;  %v5680_v19 = vld [vmem:[%s6397_s9 + $0xba4] ss:$8 sps:$4 sm:$0xff]   ;;  %v5675_v20 = vld [vmem:[%s6397_s9 + $0x3a0] ss:$8 sps:$4 sm:$0xff]  }
 0x103   : > { %4064 = vmatprep.subr.bf16.mxu0 %v5596_v21  ;;  %v5678_v21 = vld [vmem:[%s6397_s9 + $0xba0] ss:$8 sps:$4 sm:$0xff]  }
 0x105   : > { %3737 = vmatpush1.bf16.msra.mxu1 %v5591_v22  ;;  %v5683_v22 = vld [vmem:[%s6397_s9 + $0x3b4] ss:$8 sps:$4 sm:$0xff]  }
 0x106   : > { %4065 = vmatpush1.bf16.msra.mxu0 %v5594_v23  ;;  %3738 = vmatprep.subr.bf16.mxu1 %v5599_v52  ;;  %v5686_v23 = vld [vmem:[%s6397_s9 + $0xbb4] ss:$8 sps:$4 sm:$0xff]   ;;  %v5681_v52 = vld [vmem:[%s6397_s9 + $0x3b0] ss:$8 sps:$4 sm:$0xff]  }
 0x107   : > { %4066 = vmatprep.subr.bf16.mxu0 %v5602_v56  ;;  %v5684_v56 = vld [vmem:[%s6397_s9 + $0xbb0] ss:$8 sps:$4 sm:$0xff]  }
 0x109   : > { %3739 = vmatpush1.bf16.msra.mxu1 %v5597_v26  ;;  %v5689_v26 = vld [vmem:[%s6397_s9 + $0x3c4] ss:$8 sps:$4 sm:$0xff]  }
 0x10a   : > { %4067 = vmatpush1.bf16.msra.mxu0 %v5600_v27  ;;  %3740 = vmatprep.subr.bf16.mxu1 %v5605_v28  ;;  %v5692_v27 = vld [vmem:[%s6397_s9 + $0xbc4] ss:$8 sps:$4 sm:$0xff]   ;;  %v5687_v28 = vld [vmem:[%s6397_s9 + $0x3c0] ss:$8 sps:$4 sm:$0xff]  }
 0x10b   : > { %4068 = vmatprep.subr.bf16.mxu0 %v5608_v29  ;;  %v5690_v29 = vld [vmem:[%s6397_s9 + $0xbc0] ss:$8 sps:$4 sm:$0xff]  }
 0x10d   : > { %3741 = vmatpush1.bf16.msra.mxu1 %v5603_v30  ;;  %v5695_v30 = vld [vmem:[%s6397_s9 + $0x3d4] ss:$8 sps:$4 sm:$0xff]  }
 0x10e   : > { %4069 = vmatpush1.bf16.msra.mxu0 %v5606_v31  ;;  %3742 = vmatprep.subr.bf16.mxu1 %v5611_v32  ;;  %v5698_v31 = vld [vmem:[%s6397_s9 + $0xbd4] ss:$8 sps:$4 sm:$0xff]   ;;  %v5693_v32 = vld [vmem:[%s6397_s9 + $0x3d0] ss:$8 sps:$4 sm:$0xff]  }
 0x10f   : > { %4070 = vmatprep.subr.bf16.mxu0 %v5614_v33  ;;  %v5696_v33 = vld [vmem:[%s6397_s9 + $0xbd0] ss:$8 sps:$4 sm:$0xff]  }
 0x111   : > { %3743 = vmatpush1.bf16.msra.mxu1 %v5609_v34  ;;  %v5701_v34 = vld [vmem:[%s6397_s9 + $0x3e4] ss:$8 sps:$4 sm:$0xff]  }
 0x112   : > { %4071 = vmatpush1.bf16.msra.mxu0 %v5612_v35  ;;  %3753 = vmatprep.subr.bf16.mxu1 %v5617_v17  ;;  %v5704_v35 = vld [vmem:[%s6397_s9 + $0xbe4] ss:$8 sps:$4 sm:$0xff]   ;;  %v5699_v17 = vld [vmem:[%s6397_s9 + $0x3e0] ss:$8 sps:$4 sm:$0xff]  }
 0x113   : > { %4081 = vmatprep.subr.bf16.mxu0 %v5620_v37  ;;  %v5702_v37 = vld [vmem:[%s6397_s9 + $0xbe0] ss:$8 sps:$4 sm:$0xff]  }
 0x114   : > { %3745 = vmatmul.mubr.bf16.vlgmr.msra.gmra.mrb[0].mxu1 %v6660_v38 }
 0x115   : > { %4073 = vmatmul.mubr.bf16.vlgmr.msra.gmra.mrb[0].mxu0 %v6664_v39  ;;  %3754 = vmatpush1.bf16.msra.mxu1 %v5615_v40  ;;  %v6733_v40 = vld [vmem:[%s7131_s0 + $0x8] sm:$0xff] }
 0x116   : > { %4082 = vmatpush1.bf16.msra.mxu0 %v5618_v41  ;;  %3755 = vmatprep.subr.bf16.mxu1 %v5623_v42  ;;  %v6738_v41 = vld [vmem:[%s7131_s0 + $0x18] sm:$0xff] }
 0x117   : > { %4083 = vmatprep.subr.bf16.mxu0 %v5626_v44  ;;  %3785 = vmatprep.mubr.bf16.mxu1 %v890_v24  ;;  %v5707_v42 = vld [vmem:[%s6397_s9 + $0x3f4] ss:$8 sps:$4 sm:$0xff]   ;;  %v6744_v24 = vrot.slane %v6733_v40, %v6456_v49 }
 0x118   : > { %4113 = vmatprep.mubr.bf16.mxu0 %v988_v45  ;;  %v5710_v44 = vld [vmem:[%s6397_s9 + $0xbf4] ss:$8 sps:$4 sm:$0xff]   ;;  %v6748_v45 = vrot.slane %v6738_v41, %v6456_v49 }
 0x119   : > { %3756 = vmatpush1.bf16.msra.mxu1 %v5621_v25  ;;  %v5705_v25 = vld [vmem:[%s6397_s9 + $0x3f0] ss:$8 sps:$4 sm:$0xff]  }
 0x11a   : > { %4084 = vmatpush1.bf16.msra.mxu0 %v5624_v46  ;;  %3757 = vmatprep.subr.bf16.mxu1 %v5629_v36  ;;  %v5708_v46 = vld [vmem:[%s6397_s9 + $0xbf0] ss:$8 sps:$4 sm:$0xff]   ;;  %v5713_v36 = vld [vmem:[%s6397_s9 + $0x404] ss:$8 sps:$4 sm:$0xff]  }
 0x11b   : > { %4085 = vmatprep.subr.bf16.mxu0 %v5632_v47  ;;  %v5716_v47 = vld [vmem:[%s6397_s9 + $0xc04] ss:$8 sps:$4 sm:$0xff]  }
 0x11d   : > { %3758 = vmatpush1.bf16.msra.mxu1 %v5627_v16  ;;  %v906_v16 = vcombine.high %v6744_v24, %v6744_v24 }
 0x11e   : > { %4086 = vmatpush1.bf16.msra.mxu0 %v5630_v48  ;;  %3759 = vmatprep.subr.bf16.mxu1 %v5635_v50  ;;  %v1004_v48 = vcombine.high %v6748_v45, %v6748_v45  ;;  %v5711_v50 = vld [vmem:[%s6397_s9 + $0x400] ss:$8 sps:$4 sm:$0xff]  }
 0x11f   : > { %4087 = vmatprep.subr.bf16.mxu0 %v5638_v51  ;;  %v5714_v51 = vld [vmem:[%s6397_s9 + $0xc00] ss:$8 sps:$4 sm:$0xff]  }
 0x121   : > { %3760 = vmatpush1.bf16.msra.mxu1 %v5633_v53  ;;  %v888_v53 = vcombine.high %v6660_v38, %v6660_v38  ;;  %v5717_v38 = vld [vmem:[%s6397_s9 + $0x410] ss:$8 sps:$4 sm:$0xff]  }
 0x122   : > { %4088 = vmatpush1.bf16.msra.mxu0 %v5636_v54  ;;  %3761 = vmatprep.subr.bf16.mxu1 %v5641_v55  ;;  %v986_v54 = vcombine.high %v6664_v39, %v6664_v39  ;;  %v5719_v55 = vld [vmem:[%s6397_s9 + $0x414] ss:$8 sps:$4 sm:$0xff]   ;;  %v5720_v39 = vld [vmem:[%s6397_s9 + $0xc10] ss:$8 sps:$4 sm:$0xff]  }
 0x123   : > { %4089 = vmatprep.subr.bf16.mxu0 %v5644_v57  ;;  %v5722_v57 = vld [vmem:[%s6397_s9 + $0xc14] ss:$8 sps:$4 sm:$0xff]  }
 0x125   : > { %3762 = vmatpush1.bf16.msra.mxu1 %v5639_v58  ;;  %v6767_v58 = vrot.slane %v906_v16, %v6456_v49  ;;  %v5789_v16 = vld [vmem:[%s6397_s9 + $0x4d0] ss:$8 sps:$4 sm:$0xff]  }
 0x126   : > { %4090 = vmatpush1.bf16.msra.mxu0 %v5642_v59  ;;  %3763 = vmatprep.subr.bf16.mxu1 %v5647_v60  ;;  %v6770_v59 = vrot.slane %v1004_v48, %v6456_v49  ;;  %v5725_v60 = vld [vmem:[%s6397_s9 + $0x424] ss:$8 sps:$4 sm:$0xff]   ;;  %v5792_v48 = vld [vmem:[%s6397_s9 + $0xcd0] ss:$8 sps:$4 sm:$0xff]  }
 0x127   : > { %4091 = vmatprep.subr.bf16.mxu0 %v5650_v61  ;;  %v5728_v61 = vld [vmem:[%s6397_s9 + $0xc24] ss:$8 sps:$4 sm:$0xff]  }
 0x129   : > { %3764 = vmatpush1.bf16.msra.mxu1 %v5645_v62  ;;  %v5723_v62 = vld [vmem:[%s6397_s9 + $0x420] ss:$8 sps:$4 sm:$0xff]  }
 0x12a   : > { %4092 = vmatpush1.bf16.msra.mxu0 %v5648_v63  ;;  %3765 = vmatprep.subr.bf16.mxu1 %v5653_v0  ;;  %v5726_v63 = vld [vmem:[%s6397_s9 + $0xc20] ss:$8 sps:$4 sm:$0xff]   ;;  %v5731_v0 = vld [vmem:[%s6397_s9 + $0x434] ss:$8 sps:$4 sm:$0xff]  }
 0x12b   : > { %4093 = vmatprep.subr.bf16.mxu0 %v5656_v1  ;;  %v5734_v1 = vld [vmem:[%s6397_s9 + $0xc34] ss:$8 sps:$4 sm:$0xff]  }
 0x12d   : > { %3766 = vmatpush1.bf16.msra.mxu1 %v5651_v2  ;;  %v5729_v2 = vld [vmem:[%s6397_s9 + $0x430] ss:$8 sps:$4 sm:$0xff]  }
 0x12e   : > { %4094 = vmatpush1.bf16.msra.mxu0 %v5654_v3  ;;  %3767 = vmatprep.subr.bf16.mxu1 %v5659_v4  ;;  %v5732_v3 = vld [vmem:[%s6397_s9 + $0xc30] ss:$8 sps:$4 sm:$0xff]   ;;  %v5737_v4 = vld [vmem:[%s6397_s9 + $0x444] ss:$8 sps:$4 sm:$0xff]  }
 0x12f   : > { %4095 = vmatprep.subr.bf16.mxu0 %v5662_v5  ;;  %v5740_v5 = vld [vmem:[%s6397_s9 + $0xc44] ss:$8 sps:$4 sm:$0xff]  }
 0x131   : > { %3768 = vmatpush1.bf16.msra.mxu1 %v5657_v6  ;;  %v5735_v6 = vld [vmem:[%s6397_s9 + $0x440] ss:$8 sps:$4 sm:$0xff]  }
 0x132   : > { %4096 = vmatpush1.bf16.msra.mxu0 %v5660_v7  ;;  %3769 = vmatprep.subr.bf16.mxu1 %v5665_v8  ;;  %v5738_v7 = vld [vmem:[%s6397_s9 + $0xc40] ss:$8 sps:$4 sm:$0xff]   ;;  %v5743_v8 = vld [vmem:[%s6397_s9 + $0x454] ss:$8 sps:$4 sm:$0xff]  }
 0x133   : > { %4097 = vmatprep.subr.bf16.mxu0 %v5668_v9  ;;  %v5746_v9 = vld [vmem:[%s6397_s9 + $0xc54] ss:$8 sps:$4 sm:$0xff]  }
 0x135   : > { %3770 = vmatpush1.bf16.msra.mxu1 %v5663_v10  ;;  %v5741_v10 = vld [vmem:[%s6397_s9 + $0x450] ss:$8 sps:$4 sm:$0xff]  }
 0x136   : > { %4098 = vmatpush1.bf16.msra.mxu0 %v5666_v11  ;;  %3771 = vmatprep.subr.bf16.mxu1 %v5671_v12  ;;  %v5744_v11 = vld [vmem:[%s6397_s9 + $0xc50] ss:$8 sps:$4 sm:$0xff]   ;;  %v5749_v12 = vld [vmem:[%s6397_s9 + $0x464] ss:$8 sps:$4 sm:$0xff]  }
 0x137   : > { %4099 = vmatprep.subr.bf16.mxu0 %v5674_v13  ;;  %v5752_v13 = vld [vmem:[%s6397_s9 + $0xc64] ss:$8 sps:$4 sm:$0xff]  }
 0x139   : > { %3772 = vmatpush1.bf16.msra.mxu1 %v5669_v14  ;;  %v5747_v14 = vld [vmem:[%s6397_s9 + $0x460] ss:$8 sps:$4 sm:$0xff]  }
 0x13a   : > { %4100 = vmatpush1.bf16.msra.mxu0 %v5672_v15  ;;  %3773 = vmatprep.subr.bf16.mxu1 %v5677_v18  ;;  %v5750_v15 = vld [vmem:[%s6397_s9 + $0xc60] ss:$8 sps:$4 sm:$0xff]   ;;  %v5755_v18 = vld [vmem:[%s6397_s9 + $0x474] ss:$8 sps:$4 sm:$0xff]  }
 0x13b   : > { %4101 = vmatprep.subr.bf16.mxu0 %v5680_v19  ;;  %v5758_v19 = vld [vmem:[%s6397_s9 + $0xc74] ss:$8 sps:$4 sm:$0xff]  }
 0x13d   : > { %3774 = vmatpush1.bf16.msra.mxu1 %v5675_v20  ;;  %v5753_v20 = vld [vmem:[%s6397_s9 + $0x470] ss:$8 sps:$4 sm:$0xff]  }
 0x13e   : > { %4102 = vmatpush1.bf16.msra.mxu0 %v5678_v21  ;;  %3775 = vmatprep.subr.bf16.mxu1 %v5683_v22  ;;  %v5756_v21 = vld [vmem:[%s6397_s9 + $0xc70] ss:$8 sps:$4 sm:$0xff]   ;;  %v5761_v22 = vld [vmem:[%s6397_s9 + $0x484] ss:$8 sps:$4 sm:$0xff]  }
 0x13f   : > { %4103 = vmatprep.subr.bf16.mxu0 %v5686_v23  ;;  %v5764_v23 = vld [vmem:[%s6397_s9 + $0xc84] ss:$8 sps:$4 sm:$0xff]  }
 0x141   : > { %3776 = vmatpush1.bf16.msra.mxu1 %v5681_v52  ;;  %v5759_v52 = vld [vmem:[%s6397_s9 + $0x480] ss:$8 sps:$4 sm:$0xff]  }
 0x142   : > { %4104 = vmatpush1.bf16.msra.mxu0 %v5684_v56  ;;  %3777 = vmatprep.subr.bf16.mxu1 %v5689_v26  ;;  %v5762_v56 = vld [vmem:[%s6397_s9 + $0xc80] ss:$8 sps:$4 sm:$0xff]   ;;  %v5767_v26 = vld [vmem:[%s6397_s9 + $0x494] ss:$8 sps:$4 sm:$0xff]  }
 0x143   : > { %4105 = vmatprep.subr.bf16.mxu0 %v5692_v27  ;;  %v5770_v27 = vld [vmem:[%s6397_s9 + $0xc94] ss:$8 sps:$4 sm:$0xff]  }
 0x145   : > { %3778 = vmatpush1.bf16.msra.mxu1 %v5687_v28  ;;  %v5765_v28 = vld [vmem:[%s6397_s9 + $0x490] ss:$8 sps:$4 sm:$0xff]  }
 0x146   : > { %4106 = vmatpush1.bf16.msra.mxu0 %v5690_v29  ;;  %3779 = vmatprep.subr.bf16.mxu1 %v5695_v30  ;;  %v5768_v29 = vld [vmem:[%s6397_s9 + $0xc90] ss:$8 sps:$4 sm:$0xff]   ;;  %v5773_v30 = vld [vmem:[%s6397_s9 + $0x4a4] ss:$8 sps:$4 sm:$0xff]  }
 0x147   : > { %4107 = vmatprep.subr.bf16.mxu0 %v5698_v31  ;;  %v5776_v31 = vld [vmem:[%s6397_s9 + $0xca4] ss:$8 sps:$4 sm:$0xff]  }
 0x149   : > { %3780 = vmatpush1.bf16.msra.mxu1 %v5693_v32  ;;  %v5771_v32 = vld [vmem:[%s6397_s9 + $0x4a0] ss:$8 sps:$4 sm:$0xff]  }
 0x14a   : > { %4108 = vmatpush1.bf16.msra.mxu0 %v5696_v33  ;;  %3781 = vmatprep.subr.bf16.mxu1 %v5701_v34  ;;  %v5774_v33 = vld [vmem:[%s6397_s9 + $0xca0] ss:$8 sps:$4 sm:$0xff]   ;;  %v5779_v34 = vld [vmem:[%s6397_s9 + $0x4b4] ss:$8 sps:$4 sm:$0xff]  }
 0x14b   : > { %4109 = vmatprep.subr.bf16.mxu0 %v5704_v35  ;;  %v5782_v35 = vld [vmem:[%s6397_s9 + $0xcb4] ss:$8 sps:$4 sm:$0xff]  }
 0x14d   : > { %3782 = vmatpush1.bf16.msra.mxu1 %v5699_v17  ;;  %v5777_v17 = vld [vmem:[%s6397_s9 + $0x4b0] ss:$8 sps:$4 sm:$0xff]  }
 0x14e   : > { %4110 = vmatpush1.bf16.msra.mxu0 %v5702_v37  ;;  %3783 = vmatprep.subr.bf16.mxu1 %v5707_v42  ;;  %v5780_v37 = vld [vmem:[%s6397_s9 + $0xcb0] ss:$8 sps:$4 sm:$0xff]   ;;  %v5785_v42 = vld [vmem:[%s6397_s9 + $0x4c4] ss:$8 sps:$4 sm:$0xff]  }
 0x14f   : > { %4111 = vmatprep.subr.bf16.mxu0 %v5710_v44  ;;  %v5788_v44 = vld [vmem:[%s6397_s9 + $0xcc4] ss:$8 sps:$4 sm:$0xff]  }
 0x151   : > { %3784 = vmatpush1.bf16.msra.mxu1 %v5705_v25  ;;  %v5783_v25 = vld [vmem:[%s6397_s9 + $0x4c0] ss:$8 sps:$4 sm:$0xff]  }
 0x152   : > { %4112 = vmatpush1.bf16.msra.mxu0 %v5708_v46  ;;  %3794 = vmatprep.subr.bf16.mxu1 %v5713_v36  ;;  %v5786_v46 = vld [vmem:[%s6397_s9 + $0xcc0] ss:$8 sps:$4 sm:$0xff]   ;;  %v5791_v36 = vld [vmem:[%s6397_s9 + $0x4d4] ss:$8 sps:$4 sm:$0xff]  }
 0x153   : > { %4122 = vmatprep.subr.bf16.mxu0 %v5716_v47  ;;  %v5794_v47 = vld [vmem:[%s6397_s9 + $0xcd4] ss:$8 sps:$4 sm:$0xff]  }
 0x154   : > { %3786 = vmatmul.mubr.bf16.vlgmr.msra.gmra.mrb[0].mxu1 %v888_v53  ;;  %v5795_v53 = vld [vmem:[%s6397_s9 + $0x4e0] ss:$8 sps:$4 sm:$0xff]  }
 0x155   : > { %4114 = vmatmul.mubr.bf16.vlgmr.msra.gmra.mrb[0].mxu0 %v986_v54  ;;  %3795 = vmatpush1.bf16.msra.mxu1 %v5711_v50  ;;  %v5797_v50 = vld [vmem:[%s6397_s9 + $0x4e4] ss:$8 sps:$4 sm:$0xff]   ;;  %v5798_v54 = vld [vmem:[%s6397_s9 + $0xce0] ss:$8 sps:$4 sm:$0xff]  }
 0x156   : > { %4123 = vmatpush1.bf16.msra.mxu0 %v5714_v51  ;;  %3796 = vmatprep.subr.bf16.mxu1 %v5719_v55  ;;  %v5800_v51 = vld [vmem:[%s6397_s9 + $0xce4] ss:$8 sps:$4 sm:$0xff]   ;;  %v5803_v55 = vld [vmem:[%s6397_s9 + $0x4f4] ss:$8 sps:$4 sm:$0xff]  }
 0x157   : > { %4124 = vmatprep.subr.bf16.mxu0 %v5722_v57  ;;  %3826 = vmatprep.mubr.bf16.mxu1 %v6767_v58  ;;  %v5806_v57 = vld [vmem:[%s6397_s9 + $0xcf4] ss:$8 sps:$4 sm:$0xff]  }
 0x158   : > { %4154 = vmatprep.mubr.bf16.mxu0 %v6770_v59 }
 0x159   : > { %3797 = vmatpush1.bf16.msra.mxu1 %v5717_v38  ;;  %v5801_v38 = vld [vmem:[%s6397_s9 + $0x4f0] ss:$8 sps:$4 sm:$0xff]  }
 0x15a   : > { %4125 = vmatpush1.bf16.msra.mxu0 %v5720_v39  ;;  %3798 = vmatprep.subr.bf16.mxu1 %v5725_v60  ;;  %v5804_v39 = vld [vmem:[%s6397_s9 + $0xcf0] ss:$8 sps:$4 sm:$0xff]   ;;  %v5809_v60 = vld [vmem:[%s6397_s9 + $0x504] ss:$8 sps:$4 sm:$0xff]  }
 0x15b   : > { %4126 = vmatprep.subr.bf16.mxu0 %v5728_v61  ;;  %v5812_v61 = vld [vmem:[%s6397_s9 + $0xd04] ss:$8 sps:$4 sm:$0xff]  }
 0x15d   : > { %3799 = vmatpush1.bf16.msra.mxu1 %v5723_v62  ;;  %v6836_v62 = vrot.slane %v6744_v24, %v6456_v49  ;;  %v938_v24 = vcombine.high %v6767_v58, %v6767_v58  ;;  %v5821_v58 = vld [vmem:[%s6397_s9 + $0x524] ss:$8 sps:$4 sm:$0xff]  }
 0x15e   : > { %4127 = vmatpush1.bf16.msra.mxu0 %v5726_v63  ;;  %3800 = vmatprep.subr.bf16.mxu1 %v5731_v0  ;;  %v6840_v63 = vrot.slane %v6748_v45, %v6456_v49  ;;  %v5807_v0 = vld [vmem:[%s6397_s9 + $0x500] ss:$8 sps:$4 sm:$0xff]   ;;  %v5813_v45 = vld [vmem:[%s6397_s9 + $0x510] ss:$8 sps:$4 sm:$0xff]  }
 0x15f   : > { %4128 = vmatprep.subr.bf16.mxu0 %v5734_v1  ;;  %v5810_v1 = vld [vmem:[%s6397_s9 + $0xd00] ss:$8 sps:$4 sm:$0xff]  }
 0x161   : > { %3801 = vmatpush1.bf16.msra.mxu1 %v5729_v2  ;;  %v5815_v2 = vld [vmem:[%s6397_s9 + $0x514] ss:$8 sps:$4 sm:$0xff]  }
 0x162   : > { %4129 = vmatpush1.bf16.msra.mxu0 %v5732_v3  ;;  %3802 = vmatprep.subr.bf16.mxu1 %v5737_v4  ;;  %v5818_v3 = vld [vmem:[%s6397_s9 + $0xd14] ss:$8 sps:$4 sm:$0xff]   ;;  %v1036_v4 = vcombine.high %v6770_v59, %v6770_v59  ;;  %v5819_v59 = vld [vmem:[%s6397_s9 + $0x520] ss:$8 sps:$4 sm:$0xff]  }
 0x163   : > { %4130 = vmatprep.subr.bf16.mxu0 %v5740_v5  ;;  %v5816_v5 = vld [vmem:[%s6397_s9 + $0xd10] ss:$8 sps:$4 sm:$0xff]  }
 0x165   : > { %3803 = vmatpush1.bf16.msra.mxu1 %v5735_v6  ;;  %v5824_v6 = vld [vmem:[%s6397_s9 + $0xd24] ss:$8 sps:$4 sm:$0xff]  }
 0x166   : > { %4131 = vmatpush1.bf16.msra.mxu0 %v5738_v7  ;;  %3804 = vmatprep.subr.bf16.mxu1 %v5743_v8  ;;  %v5822_v7 = vld [vmem:[%s6397_s9 + $0xd20] ss:$8 sps:$4 sm:$0xff]   ;;  %v5827_v8 = vld [vmem:[%s6397_s9 + $0x534] ss:$8 sps:$4 sm:$0xff]  }
 0x167   : > { %4132 = vmatprep.subr.bf16.mxu0 %v5746_v9  ;;  %v5830_v9 = vld [vmem:[%s6397_s9 + $0xd34] ss:$8 sps:$4 sm:$0xff]  }
 0x169   : > { %3805 = vmatpush1.bf16.msra.mxu1 %v5741_v10  ;;  %v5825_v10 = vld [vmem:[%s6397_s9 + $0x530] ss:$8 sps:$4 sm:$0xff]  }
 0x16a   : > { %4133 = vmatpush1.bf16.msra.mxu0 %v5744_v11  ;;  %3806 = vmatprep.subr.bf16.mxu1 %v5749_v12  ;;  %v5828_v11 = vld [vmem:[%s6397_s9 + $0xd30] ss:$8 sps:$4 sm:$0xff]   ;;  %v5833_v12 = vld [vmem:[%s6397_s9 + $0x544] ss:$8 sps:$4 sm:$0xff]  }
 0x16b   : > { %4134 = vmatprep.subr.bf16.mxu0 %v5752_v13  ;;  %v5836_v13 = vld [vmem:[%s6397_s9 + $0xd44] ss:$8 sps:$4 sm:$0xff]  }
 0x16d   : > { %3807 = vmatpush1.bf16.msra.mxu1 %v5747_v14  ;;  %v5831_v14 = vld [vmem:[%s6397_s9 + $0x540] ss:$8 sps:$4 sm:$0xff]  }
 0x16e   : > { %4135 = vmatpush1.bf16.msra.mxu0 %v5750_v15  ;;  %3808 = vmatprep.subr.bf16.mxu1 %v5755_v18  ;;  %v5834_v15 = vld [vmem:[%s6397_s9 + $0xd40] ss:$8 sps:$4 sm:$0xff]   ;;  %v5839_v18 = vld [vmem:[%s6397_s9 + $0x554] ss:$8 sps:$4 sm:$0xff]  }
 0x16f   : > { %4136 = vmatprep.subr.bf16.mxu0 %v5758_v19  ;;  %v5842_v19 = vld [vmem:[%s6397_s9 + $0xd54] ss:$8 sps:$4 sm:$0xff]  }
 0x171   : > { %3809 = vmatpush1.bf16.msra.mxu1 %v5753_v20  ;;  %v5837_v20 = vld [vmem:[%s6397_s9 + $0x550] ss:$8 sps:$4 sm:$0xff]  }
 0x172   : > { %4137 = vmatpush1.bf16.msra.mxu0 %v5756_v21  ;;  %3810 = vmatprep.subr.bf16.mxu1 %v5761_v22  ;;  %v5840_v21 = vld [vmem:[%s6397_s9 + $0xd50] ss:$8 sps:$4 sm:$0xff]   ;;  %v5845_v22 = vld [vmem:[%s6397_s9 + $0x564] ss:$8 sps:$4 sm:$0xff]  }
 0x173   : > { %4138 = vmatprep.subr.bf16.mxu0 %v5764_v23  ;;  %v5848_v23 = vld [vmem:[%s6397_s9 + $0xd64] ss:$8 sps:$4 sm:$0xff]  }
 0x175   : > { %3811 = vmatpush1.bf16.msra.mxu1 %v5759_v52  ;;  %v5843_v52 = vld [vmem:[%s6397_s9 + $0x560] ss:$8 sps:$4 sm:$0xff]  }
 0x176   : > { %4139 = vmatpush1.bf16.msra.mxu0 %v5762_v56  ;;  %3812 = vmatprep.subr.bf16.mxu1 %v5767_v26  ;;  %v5846_v56 = vld [vmem:[%s6397_s9 + $0xd60] ss:$8 sps:$4 sm:$0xff]   ;;  %v5851_v26 = vld [vmem:[%s6397_s9 + $0x574] ss:$8 sps:$4 sm:$0xff]  }
 0x177   : > { %4140 = vmatprep.subr.bf16.mxu0 %v5770_v27  ;;  %v5854_v27 = vld [vmem:[%s6397_s9 + $0xd74] ss:$8 sps:$4 sm:$0xff]  }
 0x179   : > { %3813 = vmatpush1.bf16.msra.mxu1 %v5765_v28  ;;  %v5849_v28 = vld [vmem:[%s6397_s9 + $0x570] ss:$8 sps:$4 sm:$0xff]  }
 0x17a   : > { %4141 = vmatpush1.bf16.msra.mxu0 %v5768_v29  ;;  %3814 = vmatprep.subr.bf16.mxu1 %v5773_v30  ;;  %v5852_v29 = vld [vmem:[%s6397_s9 + $0xd70] ss:$8 sps:$4 sm:$0xff]   ;;  %v5857_v30 = vld [vmem:[%s6397_s9 + $0x584] ss:$8 sps:$4 sm:$0xff]  }
 0x17b   : > { %4142 = vmatprep.subr.bf16.mxu0 %v5776_v31  ;;  %v5860_v31 = vld [vmem:[%s6397_s9 + $0xd84] ss:$8 sps:$4 sm:$0xff]  }
 0x17d   : > { %3815 = vmatpush1.bf16.msra.mxu1 %v5771_v32  ;;  %v5855_v32 = vld [vmem:[%s6397_s9 + $0x580] ss:$8 sps:$4 sm:$0xff]  }
 0x17e   : > { %4143 = vmatpush1.bf16.msra.mxu0 %v5774_v33  ;;  %3816 = vmatprep.subr.bf16.mxu1 %v5779_v34  ;;  %v5858_v33 = vld [vmem:[%s6397_s9 + $0xd80] ss:$8 sps:$4 sm:$0xff]   ;;  %v5863_v34 = vld [vmem:[%s6397_s9 + $0x594] ss:$8 sps:$4 sm:$0xff]  }
 0x17f   : > { %4144 = vmatprep.subr.bf16.mxu0 %v5782_v35  ;;  %v5866_v35 = vld [vmem:[%s6397_s9 + $0xd94] ss:$8 sps:$4 sm:$0xff]  }
 0x181   : > { %3817 = vmatpush1.bf16.msra.mxu1 %v5777_v17  ;;  %v5861_v17 = vld [vmem:[%s6397_s9 + $0x590] ss:$8 sps:$4 sm:$0xff]  }
 0x182   : > { %4145 = vmatpush1.bf16.msra.mxu0 %v5780_v37  ;;  %3818 = vmatprep.subr.bf16.mxu1 %v5785_v42  ;;  %v5864_v37 = vld [vmem:[%s6397_s9 + $0xd90] ss:$8 sps:$4 sm:$0xff]   ;;  %v5869_v42 = vld [vmem:[%s6397_s9 + $0x5a4] ss:$8 sps:$4 sm:$0xff]  }
 0x183   : > { %4146 = vmatprep.subr.bf16.mxu0 %v5788_v44  ;;  %v5872_v44 = vld [vmem:[%s6397_s9 + $0xda4] ss:$8 sps:$4 sm:$0xff]  }
 0x185   : > { %3819 = vmatpush1.bf16.msra.mxu1 %v5783_v25  ;;  %v5867_v25 = vld [vmem:[%s6397_s9 + $0x5a0] ss:$8 sps:$4 sm:$0xff]  }
 0x186   : > { %4147 = vmatpush1.bf16.msra.mxu0 %v5786_v46  ;;  %3820 = vmatprep.subr.bf16.mxu1 %v5791_v36  ;;  %v5870_v46 = vld [vmem:[%s6397_s9 + $0xda0] ss:$8 sps:$4 sm:$0xff]   ;;  %v5875_v36 = vld [vmem:[%s6397_s9 + $0x5b4] ss:$8 sps:$4 sm:$0xff]  }
 0x187   : > { %4148 = vmatprep.subr.bf16.mxu0 %v5794_v47  ;;  %v5878_v47 = vld [vmem:[%s6397_s9 + $0xdb4] ss:$8 sps:$4 sm:$0xff]  }
 0x189   : > { %3821 = vmatpush1.bf16.msra.mxu1 %v5789_v16  ;;  %v5873_v16 = vld [vmem:[%s6397_s9 + $0x5b0] ss:$8 sps:$4 sm:$0xff]  }
 0x18a   : > { %4149 = vmatpush1.bf16.msra.mxu0 %v5792_v48  ;;  %3822 = vmatprep.subr.bf16.mxu1 %v5797_v50  ;;  %v5876_v48 = vld [vmem:[%s6397_s9 + $0xdb0] ss:$8 sps:$4 sm:$0xff]   ;;  %v5881_v50 = vld [vmem:[%s6397_s9 + $0x5c4] ss:$8 sps:$4 sm:$0xff]  }
 0x18b   : > { %4150 = vmatprep.subr.bf16.mxu0 %v5800_v51  ;;  %v5884_v51 = vld [vmem:[%s6397_s9 + $0xdc4] ss:$8 sps:$4 sm:$0xff]  }
 0x18d   : > { %3823 = vmatpush1.bf16.msra.mxu1 %v5795_v53  ;;  %v5879_v53 = vld [vmem:[%s6397_s9 + $0x5c0] ss:$8 sps:$4 sm:$0xff]  }
 0x18e   : > { %4151 = vmatpush1.bf16.msra.mxu0 %v5798_v54  ;;  %3824 = vmatprep.subr.bf16.mxu1 %v5803_v55  ;;  %v5882_v54 = vld [vmem:[%s6397_s9 + $0xdc0] ss:$8 sps:$4 sm:$0xff]   ;;  %v5887_v55 = vld [vmem:[%s6397_s9 + $0x5d4] ss:$8 sps:$4 sm:$0xff]  }
 0x18f   : > { %4152 = vmatprep.subr.bf16.mxu0 %v5806_v57  ;;  %v5890_v57 = vld [vmem:[%s6397_s9 + $0xdd4] ss:$8 sps:$4 sm:$0xff]  }
 0x191   : > { %3825 = vmatpush1.bf16.msra.mxu1 %v5801_v38  ;;  %v5885_v38 = vld [vmem:[%s6397_s9 + $0x5d0] ss:$8 sps:$4 sm:$0xff]  }
 0x192   : > { %4153 = vmatpush1.bf16.msra.mxu0 %v5804_v39  ;;  %3835 = vmatprep.subr.bf16.mxu1 %v5809_v60  ;;  %v5888_v39 = vld [vmem:[%s6397_s9 + $0xdd0] ss:$8 sps:$4 sm:$0xff]   ;;  %v5893_v60 = vld [vmem:[%s6397_s9 + $0x5e4] ss:$8 sps:$4 sm:$0xff]  }
 0x193   : > { %4163 = vmatprep.subr.bf16.mxu0 %v5812_v61  ;;  %v5896_v61 = vld [vmem:[%s6397_s9 + $0xde4] ss:$8 sps:$4 sm:$0xff]  }
 0x194   : > { %3827 = vmatmul.mubr.bf16.vlgmr.msra.gmra.mrb[0].mxu1 %v6836_v62 }
 0x195   : > { %4155 = vmatmul.mubr.bf16.vlgmr.msra.gmra.mrb[0].mxu0 %v6840_v63  ;;  %3836 = vmatpush1.bf16.msra.mxu1 %v5807_v0  ;;  %v891_v0 = vcombine.high %v6733_v40, %v6733_v40  ;;  %v5897_v40 = vld [vmem:[%s6397_s9 + $0x5f0] ss:$8 sps:$4 sm:$0xff]  }
 0x196   : > { %4164 = vmatpush1.bf16.msra.mxu0 %v5810_v1  ;;  %3837 = vmatprep.subr.bf16.mxu1 %v5815_v2  ;;  %v989_v1 = vcombine.high %v6738_v41, %v6738_v41  ;;  %v5891_v2 = vld [vmem:[%s6397_s9 + $0x5e0] ss:$8 sps:$4 sm:$0xff]   ;;  %v5900_v41 = vld [vmem:[%s6397_s9 + $0xdf0] ss:$8 sps:$4 sm:$0xff]  }
 0x197   : > { %4165 = vmatprep.subr.bf16.mxu0 %v5818_v3  ;;  %3867 = vmatprep.mubr.bf16.mxu1 %v938_v24  ;;  %v5894_v3 = vld [vmem:[%s6397_s9 + $0xde0] ss:$8 sps:$4 sm:$0xff]   ;;  %v5899_v24 = vld [vmem:[%s6397_s9 + $0x5f4] ss:$8 sps:$4 sm:$0xff]  }
 0x198   : > { %4195 = vmatprep.mubr.bf16.mxu0 %v1036_v4  ;;  %v5902_v4 = vld [vmem:[%s6397_s9 + $0xdf4] ss:$8 sps:$4 sm:$0xff]  }
 0x199   : > { %3838 = vmatpush1.bf16.msra.mxu1 %v5813_v45  ;;  %v6913_v45 = vrot.slane %v891_v0, %v6456_v49  ;;  %v5969_v0 = vld [vmem:[%s6397_s9 + $0x6b0] ss:$8 sps:$4 sm:$0xff]  }
 0x19a   : > { %4166 = vmatpush1.bf16.msra.mxu0 %v5816_v5  ;;  %3839 = vmatprep.subr.bf16.mxu1 %v5821_v58  ;;  %v6916_v5 = vrot.slane %v989_v1, %v6456_v49  ;;  %v5905_v58 = vld [vmem:[%s6397_s9 + $0x604] ss:$8 sps:$4 sm:$0xff]   ;;  %v5972_v1 = vld [vmem:[%s6397_s9 + $0xeb0] ss:$8 sps:$4 sm:$0xff]  }
 0x19b   : > { %4167 = vmatprep.subr.bf16.mxu0 %v5824_v6  ;;  %v5908_v6 = vld [vmem:[%s6397_s9 + $0xe04] ss:$8 sps:$4 sm:$0xff]  }
 0x19d   : > { %3840 = vmatpush1.bf16.msra.mxu1 %v5819_v59  ;;  %v907_v59 = vcombine.high %v6913_v45, %v6913_v45 }
 0x19e   : > { %4168 = vmatpush1.bf16.msra.mxu0 %v5822_v7  ;;  %3841 = vmatprep.subr.bf16.mxu1 %v5827_v8  ;;  %v1005_v7 = vcombine.high %v6916_v5, %v6916_v5  ;;  %v936_v8 = vcombine.high %v6836_v62, %v6836_v62 }
 0x19f   : > { %4169 = vmatprep.subr.bf16.mxu0 %v5830_v9  ;;  %v1034_v9 = vcombine.high %v6840_v63, %v6840_v63  ;;  %v5909_v63 = vld [vmem:[%s6397_s9 + $0x610] ss:$8 sps:$4 sm:$0xff]  }
 0x1a0   : > { %v6938_v62 = vrot.slane %v1005_v7, %v6456_v49  ;;  %v5992_v7 = vld [vmem:[%s6397_s9 + $0xee4] ss:$8 sps:$4 sm:$0xff]  }
 0x1a1   : > { %3842 = vmatpush1.bf16.msra.mxu1 %v5825_v10  ;;  %v5903_v10 = vld [vmem:[%s6397_s9 + $0x600] ss:$8 sps:$4 sm:$0xff]  }
 0x1a2   : > { %4170 = vmatpush1.bf16.msra.mxu0 %v5828_v11  ;;  %3843 = vmatprep.subr.bf16.mxu1 %v5833_v12  ;;  %v5906_v11 = vld [vmem:[%s6397_s9 + $0xe00] ss:$8 sps:$4 sm:$0xff]   ;;  %v5911_v12 = vld [vmem:[%s6397_s9 + $0x614] ss:$8 sps:$4 sm:$0xff]  }
 0x1a3   : > { %4171 = vmatprep.subr.bf16.mxu0 %v5836_v13  ;;  %v5914_v13 = vld [vmem:[%s6397_s9 + $0xe14] ss:$8 sps:$4 sm:$0xff]  }
 0x1a5   : > { %3844 = vmatpush1.bf16.msra.mxu1 %v5831_v14  ;;  %v6935_v14 = vrot.slane %v907_v59, %v6456_v49  ;;  %v5989_v59 = vld [vmem:[%s6397_s9 + $0x6e4] ss:$8 sps:$4 sm:$0xff]  }
 0x1a6   : > { %4172 = vmatpush1.bf16.msra.mxu0 %v5834_v15  ;;  %3845 = vmatprep.subr.bf16.mxu1 %v5839_v18  ;;  %v5912_v15 = vld [vmem:[%s6397_s9 + $0xe10] ss:$8 sps:$4 sm:$0xff]   ;;  %v5917_v18 = vld [vmem:[%s6397_s9 + $0x624] ss:$8 sps:$4 sm:$0xff]  }
 0x1a7   : > { %4173 = vmatprep.subr.bf16.mxu0 %v5842_v19  ;;  %v5920_v19 = vld [vmem:[%s6397_s9 + $0xe24] ss:$8 sps:$4 sm:$0xff]  }
 0x1a9   : > { %3846 = vmatpush1.bf16.msra.mxu1 %v5837_v20  ;;  %v5915_v20 = vld [vmem:[%s6397_s9 + $0x620] ss:$8 sps:$4 sm:$0xff]  }
 0x1aa   : > { %4174 = vmatpush1.bf16.msra.mxu0 %v5840_v21  ;;  %3847 = vmatprep.subr.bf16.mxu1 %v5845_v22  ;;  %v5918_v21 = vld [vmem:[%s6397_s9 + $0xe20] ss:$8 sps:$4 sm:$0xff]   ;;  %v5923_v22 = vld [vmem:[%s6397_s9 + $0x634] ss:$8 sps:$4 sm:$0xff]  }
 0x1ab   : > { %4175 = vmatprep.subr.bf16.mxu0 %v5848_v23  ;;  %v5926_v23 = vld [vmem:[%s6397_s9 + $0xe34] ss:$8 sps:$4 sm:$0xff]  }
 0x1ad   : > { %3848 = vmatpush1.bf16.msra.mxu1 %v5843_v52  ;;  %v5921_v52 = vld [vmem:[%s6397_s9 + $0x630] ss:$8 sps:$4 sm:$0xff]  }
 0x1ae   : > { %4176 = vmatpush1.bf16.msra.mxu0 %v5846_v56  ;;  %3849 = vmatprep.subr.bf16.mxu1 %v5851_v26  ;;  %v5924_v56 = vld [vmem:[%s6397_s9 + $0xe30] ss:$8 sps:$4 sm:$0xff]   ;;  %v5929_v26 = vld [vmem:[%s6397_s9 + $0x644] ss:$8 sps:$4 sm:$0xff]  }
 0x1af   : > { %4177 = vmatprep.subr.bf16.mxu0 %v5854_v27  ;;  %v5932_v27 = vld [vmem:[%s6397_s9 + $0xe44] ss:$8 sps:$4 sm:$0xff]  }
 0x1b1   : > { %3850 = vmatpush1.bf16.msra.mxu1 %v5849_v28  ;;  %v5927_v28 = vld [vmem:[%s6397_s9 + $0x640] ss:$8 sps:$4 sm:$0xff]  }
 0x1b2   : > { %4178 = vmatpush1.bf16.msra.mxu0 %v5852_v29  ;;  %3851 = vmatprep.subr.bf16.mxu1 %v5857_v30  ;;  %v5930_v29 = vld [vmem:[%s6397_s9 + $0xe40] ss:$8 sps:$4 sm:$0xff]   ;;  %v5935_v30 = vld [vmem:[%s6397_s9 + $0x654] ss:$8 sps:$4 sm:$0xff]  }
 0x1b3   : > { %4179 = vmatprep.subr.bf16.mxu0 %v5860_v31  ;;  %v5938_v31 = vld [vmem:[%s6397_s9 + $0xe54] ss:$8 sps:$4 sm:$0xff]  }
 0x1b5   : > { %3852 = vmatpush1.bf16.msra.mxu1 %v5855_v32  ;;  %v5933_v32 = vld [vmem:[%s6397_s9 + $0x650] ss:$8 sps:$4 sm:$0xff]  }
 0x1b6   : > { %4180 = vmatpush1.bf16.msra.mxu0 %v5858_v33  ;;  %3853 = vmatprep.subr.bf16.mxu1 %v5863_v34  ;;  %v5936_v33 = vld [vmem:[%s6397_s9 + $0xe50] ss:$8 sps:$4 sm:$0xff]   ;;  %v5941_v34 = vld [vmem:[%s6397_s9 + $0x664] ss:$8 sps:$4 sm:$0xff]  }
 0x1b7   : > { %4181 = vmatprep.subr.bf16.mxu0 %v5866_v35  ;;  %v5944_v35 = vld [vmem:[%s6397_s9 + $0xe64] ss:$8 sps:$4 sm:$0xff]  }
 0x1b9   : > { %3854 = vmatpush1.bf16.msra.mxu1 %v5861_v17  ;;  %v5939_v17 = vld [vmem:[%s6397_s9 + $0x660] ss:$8 sps:$4 sm:$0xff]  }
 0x1ba   : > { %4182 = vmatpush1.bf16.msra.mxu0 %v5864_v37  ;;  %3855 = vmatprep.subr.bf16.mxu1 %v5869_v42  ;;  %v5942_v37 = vld [vmem:[%s6397_s9 + $0xe60] ss:$8 sps:$4 sm:$0xff]   ;;  %v5947_v42 = vld [vmem:[%s6397_s9 + $0x674] ss:$8 sps:$4 sm:$0xff]  }
 0x1bb   : > { %4183 = vmatprep.subr.bf16.mxu0 %v5872_v44  ;;  %v5950_v44 = vld [vmem:[%s6397_s9 + $0xe74] ss:$8 sps:$4 sm:$0xff]  }
 0x1bd   : > { %3856 = vmatpush1.bf16.msra.mxu1 %v5867_v25  ;;  %v5945_v25 = vld [vmem:[%s6397_s9 + $0x670] ss:$8 sps:$4 sm:$0xff]  }
 0x1be   : > { %4184 = vmatpush1.bf16.msra.mxu0 %v5870_v46  ;;  %3857 = vmatprep.subr.bf16.mxu1 %v5875_v36  ;;  %v5948_v46 = vld [vmem:[%s6397_s9 + $0xe70] ss:$8 sps:$4 sm:$0xff]   ;;  %v5953_v36 = vld [vmem:[%s6397_s9 + $0x684] ss:$8 sps:$4 sm:$0xff]  }
 0x1bf   : > { %4185 = vmatprep.subr.bf16.mxu0 %v5878_v47  ;;  %v5956_v47 = vld [vmem:[%s6397_s9 + $0xe84] ss:$8 sps:$4 sm:$0xff]  }
 0x1c1   : > { %3858 = vmatpush1.bf16.msra.mxu1 %v5873_v16  ;;  %v5951_v16 = vld [vmem:[%s6397_s9 + $0x680] ss:$8 sps:$4 sm:$0xff]  }
 0x1c2   : > { %4186 = vmatpush1.bf16.msra.mxu0 %v5876_v48  ;;  %3859 = vmatprep.subr.bf16.mxu1 %v5881_v50  ;;  %v5954_v48 = vld [vmem:[%s6397_s9 + $0xe80] ss:$8 sps:$4 sm:$0xff]   ;;  %v5959_v50 = vld [vmem:[%s6397_s9 + $0x694] ss:$8 sps:$4 sm:$0xff]  }
 0x1c3   : > { %4187 = vmatprep.subr.bf16.mxu0 %v5884_v51  ;;  %v5962_v51 = vld [vmem:[%s6397_s9 + $0xe94] ss:$8 sps:$4 sm:$0xff]  }
 0x1c5   : > { %3860 = vmatpush1.bf16.msra.mxu1 %v5879_v53  ;;  %v5957_v53 = vld [vmem:[%s6397_s9 + $0x690] ss:$8 sps:$4 sm:$0xff]  }
 0x1c6   : > { %4188 = vmatpush1.bf16.msra.mxu0 %v5882_v54  ;;  %3861 = vmatprep.subr.bf16.mxu1 %v5887_v55  ;;  %v5960_v54 = vld [vmem:[%s6397_s9 + $0xe90] ss:$8 sps:$4 sm:$0xff]   ;;  %v5965_v55 = vld [vmem:[%s6397_s9 + $0x6a4] ss:$8 sps:$4 sm:$0xff]  }
 0x1c7   : > { %4189 = vmatprep.subr.bf16.mxu0 %v5890_v57  ;;  %v5968_v57 = vld [vmem:[%s6397_s9 + $0xea4] ss:$8 sps:$4 sm:$0xff]  }
 0x1c9   : > { %3862 = vmatpush1.bf16.msra.mxu1 %v5885_v38  ;;  %v5963_v38 = vld [vmem:[%s6397_s9 + $0x6a0] ss:$8 sps:$4 sm:$0xff]  }
 0x1ca   : > { %4190 = vmatpush1.bf16.msra.mxu0 %v5888_v39  ;;  %3863 = vmatprep.subr.bf16.mxu1 %v5893_v60  ;;  %v5966_v39 = vld [vmem:[%s6397_s9 + $0xea0] ss:$8 sps:$4 sm:$0xff]   ;;  %v5971_v60 = vld [vmem:[%s6397_s9 + $0x6b4] ss:$8 sps:$4 sm:$0xff]  }
 0x1cb   : > { %4191 = vmatprep.subr.bf16.mxu0 %v5896_v61  ;;  %v5974_v61 = vld [vmem:[%s6397_s9 + $0xeb4] ss:$8 sps:$4 sm:$0xff]  }
 0x1cd   : > { %3864 = vmatpush1.bf16.msra.mxu1 %v5891_v2  ;;  %v5977_v2 = vld [vmem:[%s6397_s9 + $0x6c4] ss:$8 sps:$4 sm:$0xff]  }
 0x1ce   : > { %4192 = vmatpush1.bf16.msra.mxu0 %v5894_v3  ;;  %3865 = vmatprep.subr.bf16.mxu1 %v5899_v24  ;;  %v5980_v3 = vld [vmem:[%s6397_s9 + $0xec4] ss:$8 sps:$4 sm:$0xff]   ;;  %v5975_v24 = vld [vmem:[%s6397_s9 + $0x6c0] ss:$8 sps:$4 sm:$0xff]  }
 0x1cf   : > { %4193 = vmatprep.subr.bf16.mxu0 %v5902_v4  ;;  %v5978_v4 = vld [vmem:[%s6397_s9 + $0xec0] ss:$8 sps:$4 sm:$0xff]  }
 0x1d1   : > { %3866 = vmatpush1.bf16.msra.mxu1 %v5897_v40  ;;  %v5983_v40 = vld [vmem:[%s6397_s9 + $0x6d4] ss:$8 sps:$4 sm:$0xff]  }
 0x1d2   : > { %4194 = vmatpush1.bf16.msra.mxu0 %v5900_v41  ;;  %3876 = vmatprep.subr.bf16.mxu1 %v5905_v58  ;;  %v5986_v41 = vld [vmem:[%s6397_s9 + $0xed4] ss:$8 sps:$4 sm:$0xff]   ;;  %v5981_v58 = vld [vmem:[%s6397_s9 + $0x6d0] ss:$8 sps:$4 sm:$0xff]  }
 0x1d3   : > { %4204 = vmatprep.subr.bf16.mxu0 %v5908_v6  ;;  %v5984_v6 = vld [vmem:[%s6397_s9 + $0xed0] ss:$8 sps:$4 sm:$0xff]  }
 0x1d4   : > { %3868 = vmatmul.mubr.bf16.vlgmr.msra.gmra.mrb[0].mxu1 %v936_v8  ;;  %v5987_v8 = vld [vmem:[%s6397_s9 + $0x6e0] ss:$8 sps:$4 sm:$0xff]  }
 0x1d5   : > { %4196 = vmatmul.mubr.bf16.vlgmr.msra.gmra.mrb[0].mxu0 %v1034_v9  ;;  %3877 = vmatpush1.bf16.msra.mxu1 %v5903_v10  ;;  %v5990_v9 = vld [vmem:[%s6397_s9 + $0xee0] ss:$8 sps:$4 sm:$0xff]   ;;  %v5995_v10 = vld [vmem:[%s6397_s9 + $0x6f4] ss:$8 sps:$4 sm:$0xff]  }
 0x1d6   : > { %4205 = vmatpush1.bf16.msra.mxu0 %v5906_v11  ;;  %3878 = vmatprep.subr.bf16.mxu1 %v5911_v12  ;;  %v5998_v11 = vld [vmem:[%s6397_s9 + $0xef4] ss:$8 sps:$4 sm:$0xff]   ;;  %v5993_v12 = vld [vmem:[%s6397_s9 + $0x6f0] ss:$8 sps:$4 sm:$0xff]  }
 0x1d7   : > { %4206 = vmatprep.subr.bf16.mxu0 %v5914_v13  ;;  %3908 = vmatprep.mubr.bf16.mxu1 %v6935_v14  ;;  %v5996_v13 = vld [vmem:[%s6397_s9 + $0xef0] ss:$8 sps:$4 sm:$0xff]  }
 0x1d8   : > { %4236 = vmatprep.mubr.bf16.mxu0 %v6938_v62 }
 0x1d9   : > { %3879 = vmatpush1.bf16.msra.mxu1 %v5909_v63  ;;  %v6002_v63 = vld [vmem:[%s6397_s9 + $0x704] ss:$8 sps:$4 sm:$0xff]  }
 0x1da   : > { %4207 = vmatpush1.bf16.msra.mxu0 %v5912_v15  ;;  %3880 = vmatprep.subr.bf16.mxu1 %v5917_v18  ;;  %v6006_v15 = vld [vmem:[%s6397_s9 + $0xf04] ss:$8 sps:$4 sm:$0xff]   ;;  %v7010_v18 = vrot.slane %v6913_v45, %v6456_v49  ;;  %v939_v45 = vcombine.high %v6935_v14, %v6935_v14 }
 0x1db   : > { %4208 = vmatprep.subr.bf16.mxu0 %v5920_v19  ;;  %v7014_v19 = vrot.slane %v6916_v5, %v6456_v49  ;;  %v6007_v49 = vld [vmem:[%s6397_s9 + $0x710] ss:$8 sps:$4 sm:$0xff]   ;;  %v6015_v14 = vld [vmem:[%s6397_s9 + $0x724] ss:$8 sps:$4 sm:$0xff]  }
 0x1dc   : > { %v6010_v5 = vld [vmem:[%s6397_s9 + $0xf10] ss:$8 sps:$4 sm:$0xff]  }
 0x1dd   : > { %3881 = vmatpush1.bf16.msra.mxu1 %v5915_v20  ;;  %v6000_v20 = vld [vmem:[%s6397_s9 + $0x700] ss:$8 sps:$4 sm:$0xff]  }
 0x1de   : > { %4209 = vmatpush1.bf16.msra.mxu0 %v5918_v21  ;;  %3882 = vmatprep.subr.bf16.mxu1 %v5923_v22  ;;  %v6004_v21 = vld [vmem:[%s6397_s9 + $0xf00] ss:$8 sps:$4 sm:$0xff]   ;;  %v6009_v22 = vld [vmem:[%s6397_s9 + $0x714] ss:$8 sps:$4 sm:$0xff]  }
 0x1df   : > { %4210 = vmatprep.subr.bf16.mxu0 %v5926_v23  ;;  %v6012_v23 = vld [vmem:[%s6397_s9 + $0xf14] ss:$8 sps:$4 sm:$0xff]  }
 0x1e1   : > { %3883 = vmatpush1.bf16.msra.mxu1 %v5921_v52  ;;  %v1037_v52 = vcombine.high %v6938_v62, %v6938_v62  ;;  %v6013_v62 = vld [vmem:[%s6397_s9 + $0x720] ss:$8 sps:$4 sm:$0xff]  }
 0x1e2   : > { %4211 = vmatpush1.bf16.msra.mxu0 %v5924_v56  ;;  %3884 = vmatprep.subr.bf16.mxu1 %v5929_v26  ;;  %v6018_v56 = vld [vmem:[%s6397_s9 + $0xf24] ss:$8 sps:$4 sm:$0xff]   ;;  %v6016_v26 = vld [vmem:[%s6397_s9 + $0xf20] ss:$8 sps:$4 sm:$0xff]  }
 0x1e3   : > { %4212 = vmatprep.subr.bf16.mxu0 %v5932_v27  ;;  %v6021_v27 = vld [vmem:[%s6397_s9 + $0x734] ss:$8 sps:$4 sm:$0xff]  }
 0x1e5   : > { %3885 = vmatpush1.bf16.msra.mxu1 %v5927_v28  ;;  %v6024_v28 = vld [vmem:[%s6397_s9 + $0xf34] ss:$8 sps:$4 sm:$0xff]  }
 0x1e6   : > { %4213 = vmatpush1.bf16.msra.mxu0 %v5930_v29  ;;  %3886 = vmatprep.subr.bf16.mxu1 %v5935_v30  ;;  %v6019_v29 = vld [vmem:[%s6397_s9 + $0x730] ss:$8 sps:$4 sm:$0xff]  }
 0x1e7   : > { %4214 = vmatprep.subr.bf16.mxu0 %v5938_v31  ;;  %v6022_v30 = vld [vmem:[%s6397_s9 + $0xf30] ss:$8 sps:$4 sm:$0xff]   ;;  %v6027_v31 = vld [vmem:[%s6397_s9 + $0x744] ss:$8 sps:$4 sm:$0xff]  }
 0x1e9   : > { %3887 = vmatpush1.bf16.msra.mxu1 %v5933_v32  ;;  %v6030_v32 = vld [vmem:[%s6397_s9 + $0xf44] ss:$8 sps:$4 sm:$0xff]  }
 0x1ea   : > { %4215 = vmatpush1.bf16.msra.mxu0 %v5936_v33  ;;  %3888 = vmatprep.subr.bf16.mxu1 %v5941_v34  ;;  %v6025_v33 = vld [vmem:[%s6397_s9 + $0x740] ss:$8 sps:$4 sm:$0xff]  }
 0x1eb   : > { %4216 = vmatprep.subr.bf16.mxu0 %v5944_v35  ;;  %v6028_v34 = vld [vmem:[%s6397_s9 + $0xf40] ss:$8 sps:$4 sm:$0xff]   ;;  %v6033_v35 = vld [vmem:[%s6397_s9 + $0x754] ss:$8 sps:$4 sm:$0xff]  }
 0x1ed   : > { %3889 = vmatpush1.bf16.msra.mxu1 %v5939_v17  ;;  %v6036_v17 = vld [vmem:[%s6397_s9 + $0xf54] ss:$8 sps:$4 sm:$0xff]  }
 0x1ee   : > { %4217 = vmatpush1.bf16.msra.mxu0 %v5942_v37  ;;  %3890 = vmatprep.subr.bf16.mxu1 %v5947_v42  ;;  %v6031_v37 = vld [vmem:[%s6397_s9 + $0x750] ss:$8 sps:$4 sm:$0xff]  }
 0x1ef   : > { %4218 = vmatprep.subr.bf16.mxu0 %v5950_v44  ;;  %v6034_v42 = vld [vmem:[%s6397_s9 + $0xf50] ss:$8 sps:$4 sm:$0xff]   ;;  %v6039_v44 = vld [vmem:[%s6397_s9 + $0x764] ss:$8 sps:$4 sm:$0xff]  }
 0x1f1   : > { %3891 = vmatpush1.bf16.msra.mxu1 %v5945_v25  ;;  %v6042_v25 = vld [vmem:[%s6397_s9 + $0xf64] ss:$8 sps:$4 sm:$0xff]  }
 0x1f2   : > { %4219 = vmatpush1.bf16.msra.mxu0 %v5948_v46  ;;  %3892 = vmatprep.subr.bf16.mxu1 %v5953_v36  ;;  %v6037_v46 = vld [vmem:[%s6397_s9 + $0x760] ss:$8 sps:$4 sm:$0xff]  }
 0x1f3   : > { %4220 = vmatprep.subr.bf16.mxu0 %v5956_v47  ;;  %v6040_v36 = vld [vmem:[%s6397_s9 + $0xf60] ss:$8 sps:$4 sm:$0xff]   ;;  %v6045_v47 = vld [vmem:[%s6397_s9 + $0x774] ss:$8 sps:$4 sm:$0xff]  }
 0x1f5   : > { %3893 = vmatpush1.bf16.msra.mxu1 %v5951_v16  ;;  %v6048_v16 = vld [vmem:[%s6397_s9 + $0xf74] ss:$8 sps:$4 sm:$0xff]  }
 0x1f6   : > { %4221 = vmatpush1.bf16.msra.mxu0 %v5954_v48  ;;  %3894 = vmatprep.subr.bf16.mxu1 %v5959_v50  ;;  %v6043_v48 = vld [vmem:[%s6397_s9 + $0x770] ss:$8 sps:$4 sm:$0xff]  }
 0x1f7   : > { %4222 = vmatprep.subr.bf16.mxu0 %v5962_v51  ;;  %v6046_v50 = vld [vmem:[%s6397_s9 + $0xf70] ss:$8 sps:$4 sm:$0xff]   ;;  %v6051_v51 = vld [vmem:[%s6397_s9 + $0x784] ss:$8 sps:$4 sm:$0xff]  }
 0x1f9   : > { %3895 = vmatpush1.bf16.msra.mxu1 %v5957_v53  ;;  %v6054_v53 = vld [vmem:[%s6397_s9 + $0xf84] ss:$8 sps:$4 sm:$0xff]  }
 0x1fa   : > { %4223 = vmatpush1.bf16.msra.mxu0 %v5960_v54  ;;  %3896 = vmatprep.subr.bf16.mxu1 %v5965_v55  ;;  %v6049_v54 = vld [vmem:[%s6397_s9 + $0x780] ss:$8 sps:$4 sm:$0xff]  }
 0x1fb   : > { %4224 = vmatprep.subr.bf16.mxu0 %v5968_v57  ;;  %v6052_v55 = vld [vmem:[%s6397_s9 + $0xf80] ss:$8 sps:$4 sm:$0xff]   ;;  %v6057_v57 = vld [vmem:[%s6397_s9 + $0x794] ss:$8 sps:$4 sm:$0xff]  }
 0x1fd   : > { %3897 = vmatpush1.bf16.msra.mxu1 %v5963_v38  ;;  %v6060_v38 = vld [vmem:[%s6397_s9 + $0xf94] ss:$8 sps:$4 sm:$0xff]  }
 0x1fe   : > { %4225 = vmatpush1.bf16.msra.mxu0 %v5966_v39  ;;  %3898 = vmatprep.subr.bf16.mxu1 %v5971_v60  ;;  %v6055_v39 = vld [vmem:[%s6397_s9 + $0x790] ss:$8 sps:$4 sm:$0xff]  }
 0x1ff   : > { %4226 = vmatprep.subr.bf16.mxu0 %v5974_v61  ;;  %v6058_v60 = vld [vmem:[%s6397_s9 + $0xf90] ss:$8 sps:$4 sm:$0xff]   ;;  %v6063_v61 = vld [vmem:[%s6397_s9 + $0x7a4] ss:$8 sps:$4 sm:$0xff]  }
 0x201   : > { %3899 = vmatpush1.bf16.msra.mxu1 %v5969_v0  ;;  %v6066_v0 = vld [vmem:[%s6397_s9 + $0xfa4] ss:$8 sps:$4 sm:$0xff]  }
 0x202   : > { %4227 = vmatpush1.bf16.msra.mxu0 %v5972_v1  ;;  %3900 = vmatprep.subr.bf16.mxu1 %v5977_v2  ;;  %v6061_v1 = vld [vmem:[%s6397_s9 + $0x7a0] ss:$8 sps:$4 sm:$0xff]  }
 0x203   : > { %4228 = vmatprep.subr.bf16.mxu0 %v5980_v3  ;;  %v6064_v2 = vld [vmem:[%s6397_s9 + $0xfa0] ss:$8 sps:$4 sm:$0xff]   ;;  %v6069_v3 = vld [vmem:[%s6397_s9 + $0x7b4] ss:$8 sps:$4 sm:$0xff]  }
 0x205   : > { %3901 = vmatpush1.bf16.msra.mxu1 %v5975_v24  ;;  %v6072_v24 = vld [vmem:[%s6397_s9 + $0xfb4] ss:$8 sps:$4 sm:$0xff]  }
 0x206   : > { %4229 = vmatpush1.bf16.msra.mxu0 %v5978_v4  ;;  %3902 = vmatprep.subr.bf16.mxu1 %v5983_v40  ;;  %v6067_v4 = vld [vmem:[%s6397_s9 + $0x7b0] ss:$8 sps:$4 sm:$0xff]  }
 0x207   : > { %4230 = vmatprep.subr.bf16.mxu0 %v5986_v41  ;;  %v6070_v40 = vld [vmem:[%s6397_s9 + $0xfb0] ss:$8 sps:$4 sm:$0xff]   ;;  %v6075_v41 = vld [vmem:[%s6397_s9 + $0x7c4] ss:$8 sps:$4 sm:$0xff]  }
 0x209   : > { %3903 = vmatpush1.bf16.msra.mxu1 %v5981_v58  ;;  %v6078_v58 = vld [vmem:[%s6397_s9 + $0xfc4] ss:$8 sps:$4 sm:$0xff]  }
 0x20a   : > { %4231 = vmatpush1.bf16.msra.mxu0 %v5984_v6  ;;  %3904 = vmatprep.subr.bf16.mxu1 %v5989_v59  ;;  %v6073_v6 = vld [vmem:[%s6397_s9 + $0x7c0] ss:$8 sps:$4 sm:$0xff]  }
 0x20b   : > { %4232 = vmatprep.subr.bf16.mxu0 %v5992_v7  ;;  %v6076_v59 = vld [vmem:[%s6397_s9 + $0xfc0] ss:$8 sps:$4 sm:$0xff]   ;;  %v6081_v7 = vld [vmem:[%s6397_s9 + $0x7d4] ss:$8 sps:$4 sm:$0xff]  }
 0x20d   : > { %3905 = vmatpush1.bf16.msra.mxu1 %v5987_v8  ;;  %v6084_v8 = vld [vmem:[%s6397_s9 + $0xfd4] ss:$8 sps:$4 sm:$0xff]  }
 0x20e   : > { %4233 = vmatpush1.bf16.msra.mxu0 %v5990_v9  ;;  %3906 = vmatprep.subr.bf16.mxu1 %v5995_v10  ;;  %v6079_v9 = vld [vmem:[%s6397_s9 + $0x7d0] ss:$8 sps:$4 sm:$0xff]  }
 0x20f   : > { %4234 = vmatprep.subr.bf16.mxu0 %v5998_v11  ;;  %v6082_v10 = vld [vmem:[%s6397_s9 + $0xfd0] ss:$8 sps:$4 sm:$0xff]   ;;  %v6087_v11 = vld [vmem:[%s6397_s9 + $0x7e4] ss:$8 sps:$4 sm:$0xff]  }
 0x211   : > { %3907 = vmatpush1.bf16.msra.mxu1 %v5993_v12  ;;  %v6090_v12 = vld [vmem:[%s6397_s9 + $0xfe4] ss:$8 sps:$4 sm:$0xff]  }
 0x212   : > { %4235 = vmatpush1.bf16.msra.mxu0 %v5996_v13  ;;  %3917 = vmatprep.subr.bf16.mxu1 %v6002_v63  ;;  %v6085_v13 = vld [vmem:[%s6397_s9 + $0x7e0] ss:$8 sps:$4 sm:$0xff]  }
 0x213   : > { %4245 = vmatprep.subr.bf16.mxu0 %v6006_v15  ;;  %v6088_v63 = vld [vmem:[%s6397_s9 + $0xfe0] ss:$8 sps:$4 sm:$0xff]   ;;  %v6093_v15 = vld [vmem:[%s6397_s9 + $0x7f4] ss:$8 sps:$4 sm:$0xff]  }
 0x214   : > { %3909 = vmatmul.mubr.bf16.vlgmr.msra.gmra.mrb[0].mxu1 %v7010_v18 }
 0x215   : > { %4237 = vmatmul.mubr.bf16.vlgmr.msra.gmra.mrb[0].mxu0 %v7014_v19  ;;  %3918 = vmatpush1.bf16.msra.mxu1 %v6000_v20  ;;  %v6096_v20 = vld [vmem:[%s6397_s9 + $0xff4] ss:$8 sps:$4 sm:$0xff]  }
 0x216   : > { %4246 = vmatpush1.bf16.msra.mxu0 %v6004_v21  ;;  %3919 = vmatprep.subr.bf16.mxu1 %v6009_v22  ;;  %v6091_v21 = vld [vmem:[%s6397_s9 + $0x7f0] ss:$8 sps:$4 sm:$0xff]  }
 0x217   : > { %4247 = vmatprep.subr.bf16.mxu0 %v6012_v23  ;;  %3949 = vmatprep.mubr.bf16.mxu1 %v939_v45  ;;  %v6094_v22 = vld [vmem:[%s6397_s9 + $0xff0] ss:$8 sps:$4 sm:$0xff]   ;;  %v6097_v23 = vld [vmem:[%s6954_s15 + $0x40] sm:$0xff]   ;;  %v937_v45 = vcombine.high %v7010_v18, %v7010_v18  ;;  %v6100_v18 = vld [vmem:[%s6954_s15 + $0x8] sm:$0xff]  }
 0x218   : > { %4277 = vmatprep.mubr.bf16.mxu0 %v1037_v52  ;;  %v1035_v52 = vcombine.high %v7014_v19, %v7014_v19  ;;  %v6101_v19 = vld [vmem:[%s6954_s15 + $0x50] sm:$0xff]  }
 0x219   : > { %3920 = vmatpush1.bf16.msra.mxu1 %v6007_v49  ;;  %v6098_v49 = vld [vmem:[%s6954_s15] sm:$0xff]  }
 0x21a   : > { %4248 = vmatpush1.bf16.msra.mxu0 %v6010_v5  ;;  %3921 = vmatprep.subr.bf16.mxu1 %v6015_v14  ;;  %v6099_v5 = vld [vmem:[%s6954_s15 + $0x48] sm:$0xff]   ;;  %v6235_v14 = vmov 0.0  }
 0x21b   : > { %4249 = vmatprep.subr.bf16.mxu0 %v6018_v56  ;;  %320 = vst [vmem:[#allocation2] sm:$0xf] %v6235_v14  ;;  %v6102_v56 = vld [vmem:[%s6954_s15 + $0x10] sm:$0xff]  }
 0x21d   : > { %3922 = vmatpush1.bf16.msra.mxu1 %v6013_v62  ;;  %v6103_v62 = vld [vmem:[%s6954_s15 + $0x58] sm:$0xff]  }
 0x21e   : > { %4250 = vmatpush1.bf16.msra.mxu0 %v6016_v26  ;;  %3923 = vmatprep.subr.bf16.mxu1 %v6021_v27  ;;  %v6104_v26 = vld [vmem:[%s6954_s15 + $0x18] sm:$0xff]   ;;  %v6105_v27 = vld [vmem:[%s6954_s15 + $0x60] sm:$0xff]  }
 0x21f   : > { %4251 = vmatprep.subr.bf16.mxu0 %v6024_v28  ;;  %v6106_v28 = vld [vmem:[%s6954_s15 + $0x20] sm:$0xff]  }
 0x221   : > { %3924 = vmatpush1.bf16.msra.mxu1 %v6019_v29  ;;  %v6107_v29 = vld [vmem:[%s6954_s15 + $0x68] sm:$0xff]  }
 0x222   : > { %4252 = vmatpush1.bf16.msra.mxu0 %v6022_v30  ;;  %3925 = vmatprep.subr.bf16.mxu1 %v6027_v31  ;;  %v6108_v30 = vld [vmem:[%s6954_s15 + $0x28] sm:$0xff]   ;;  %v6109_v31 = vld [vmem:[%s6954_s15 + $0x70] sm:$0xff]  }
 0x223   : > { %4253 = vmatprep.subr.bf16.mxu0 %v6030_v32  ;;  %v6110_v32 = vld [vmem:[%s6954_s15 + $0x30] sm:$0xff]  }
 0x225   : > { %3926 = vmatpush1.bf16.msra.mxu1 %v6025_v33  ;;  %v6111_v33 = vld [vmem:[%s6954_s15 + $0x78] sm:$0xff]  }
 0x226   : > { %4254 = vmatpush1.bf16.msra.mxu0 %v6028_v34  ;;  %3927 = vmatprep.subr.bf16.mxu1 %v6033_v35  ;;  %v6112_v34 = vld [vmem:[%s6954_s15 + $0x38] sm:$0xff]   ;;  %v6236_v35 = vmov 1983009808  }
 0x227   : > { %4255 = vmatprep.subr.bf16.mxu0 %v6036_v17  ;;  %v4290_v17 = vunpack.c.l.s4 %v6236_v35 }
 0x229   : > { %3928 = vmatpush1.bf16.msra.mxu1 %v6031_v37  ;;  %v4291_v37 = vunpack.c.0.s8 %v4290_v17 }
 0x22a   : > { %4256 = vmatpush1.bf16.msra.mxu0 %v6034_v42  ;;  %3929 = vmatprep.subr.bf16.mxu1 %v6039_v44 }
 0x22b   : > { %4257 = vmatprep.subr.bf16.mxu0 %v6042_v25 }
 0x22d   : > { %3930 = vmatpush1.bf16.msra.mxu1 %v6037_v46 }
 0x22e   : > { %4258 = vmatpush1.bf16.msra.mxu0 %v6040_v36  ;;  %3931 = vmatprep.subr.bf16.mxu1 %v6045_v47 }
 0x22f   : > { %4259 = vmatprep.subr.bf16.mxu0 %v6048_v16  ;;  %v4294_v16 = vsub.s32 %v4291_v37, %v6448_v43 }
 0x231   : > { %3932 = vmatpush1.bf16.msra.mxu1 %v6043_v48 }
 0x232   : > { %4260 = vmatpush1.bf16.msra.mxu0 %v6046_v50  ;;  %3933 = vmatprep.subr.bf16.mxu1 %v6051_v51  ;;  %v4307_v51 = vsub.s32 0, %v6448_v43 }
 0x233   : > { %4261 = vmatprep.subr.bf16.mxu0 %v6054_v53  ;;  %v4311_v53 = vsub.s32 1, %v6448_v43 }
 0x235   : > { %3934 = vmatpush1.bf16.msra.mxu1 %v6049_v54 }
 0x236   : > { %4262 = vmatpush1.bf16.msra.mxu0 %v6052_v55  ;;  %3935 = vmatprep.subr.bf16.mxu1 %v6057_v57  ;;  %v4303_v57 = vld [vmem:[%s6403_s29] sm:$0x3] }
 0x237   : > { %4263 = vmatprep.subr.bf16.mxu0 %v6060_v38 }
 0x239   : > { %3936 = vmatpush1.bf16.msra.mxu1 %v6055_v39  ;;  %v321_v39 = vld [vmem:[#allocation2] sm:$0xf] }
 0x23a   : > { %4264 = vmatpush1.bf16.msra.mxu0 %v6058_v60  ;;  %3937 = vmatprep.subr.bf16.mxu1 %v6063_v61  ;;  %v4308_v61 = vrot.slane %v4303_v57, %v4307_v51 }
 0x23b   : > { %4265 = vmatprep.subr.bf16.mxu0 %v6066_v0  ;;  %v4312_v0 = vrot.slane %v4303_v57, %v4311_v53 }
 0x23d   : > { %3938 = vmatpush1.bf16.msra.mxu1 %v6061_v1 }
 0x23e   : > { %4266 = vmatpush1.bf16.msra.mxu0 %v6064_v2  ;;  %3939 = vmatprep.subr.bf16.mxu1 %v6069_v3  ;;  %v4313_v2 = vcombine.low %v4308_v61, %v4312_v0 }
 0x23f   : > { %4267 = vmatprep.subr.bf16.mxu0 %v6072_v24 }
 0x240   : > { %v4320_v3 = vrot.slane %v4313_v2, %v4294_v16 }
 0x241   : > { %3940 = vmatpush1.bf16.msra.mxu1 %v6067_v4 }
 0x242   : > { %4268 = vmatpush1.bf16.msra.mxu0 %v6070_v40  ;;  %3941 = vmatprep.subr.bf16.mxu1 %v6075_v41 }
 0x243   : > { %4269 = vmatprep.subr.bf16.mxu0 %v6078_v58 }
 0x245   : > { %3942 = vmatpush1.bf16.msra.mxu1 %v6073_v6 }
 0x246   : > { %4270 = vmatpush1.bf16.msra.mxu0 %v6076_v59  ;;  %3943 = vmatprep.subr.bf16.mxu1 %v6081_v7 }
 0x247   : > { %4271 = vmatprep.subr.bf16.mxu0 %v6084_v8 }
 0x249   : > { %3944 = vmatpush1.bf16.msra.mxu1 %v6079_v9 }
 0x24a   : > { %4272 = vmatpush1.bf16.msra.mxu0 %v6082_v10  ;;  %3945 = vmatprep.subr.bf16.mxu1 %v6087_v11 }
 0x24b   : > { %4273 = vmatprep.subr.bf16.mxu0 %v6090_v12 }
 0x24d   : > { %3946 = vmatpush1.bf16.msra.mxu1 %v6085_v13 }
 0x24e   : > { %4274 = vmatpush1.bf16.msra.mxu0 %v6088_v63  ;;  %3947 = vmatprep.subr.bf16.mxu1 %v6093_v15 }
 0x24f   : > { %4275 = vmatprep.subr.bf16.mxu0 %v6096_v20 }
 0x251   : > { %3948 = vmatpush1.bf16.msra.mxu1 %v6091_v21 }
 0x252   : > { %4276 = vmatpush1.bf16.msra.mxu0 %v6094_v22  ;;  %5179 = vmatprep.subr.bf16.mxu1 %v6097_v23 }
 0x254   : > { %3950 = vmatmul.mubr.bf16.vlgmr.msra.gmra.mrb[0].mxu1 %v937_v45 }
 0x255   : > { %4278 = vmatmul.mubr.bf16.vlgmr.msra.gmra.mrb[0].mxu0 %v1035_v52  ;;  %5180 = vmatpush3.bf16.msra.mxu1 %v6098_v49 }
 0x256   : > { %5181 = vmatprep.subr.bf16.mxu1 %v6099_v5 }
 0x259   : > { %5182 = vmatpush3.bf16.msra.mxu1 %v6100_v18 }
 0x25a   : > { %5183 = vmatprep.subr.bf16.mxu1 %v6101_v19 }
 0x25d   : > { %5184 = vmatpush3.bf16.msra.mxu1 %v6102_v56 }
 0x25e   : > { %5185 = vmatprep.subr.bf16.mxu1 %v6103_v62 }
 0x261   : > { %5186 = vmatpush3.bf16.msra.mxu1 %v6104_v26 }
 0x262   : > { %5187 = vmatprep.subr.bf16.mxu1 %v6105_v27 }
 0x265   : > { %5188 = vmatpush3.bf16.msra.mxu1 %v6106_v28 }
 0x266   : > { %5189 = vmatprep.subr.bf16.mxu1 %v6107_v29 }
 0x269   : > { %5190 = vmatpush3.bf16.msra.mxu1 %v6108_v30 }
 0x26a   : > { %5191 = vmatprep.subr.bf16.mxu1 %v6109_v31 }
 0x26d   : > { %5192 = vmatpush3.bf16.msra.mxu1 %v6110_v32 }
 0x26e   : > { %5193 = vmatprep.subr.bf16.mxu1 %v6111_v33 }
 0x271   : > { %5194 = vmatpush3.bf16.msra.mxu1 %v6112_v34 }
 0x327   : > { %v3951_v42 = vpop.f32.mrb[0].mxu1 }
 0x328   : > { %v4279_v44 = vpop.f32.mrb[0].mxu0  ;;  %v3953_v46 = vpop.f32.mrb[1].mxu1 }
 0x329   : > { %v5201_v25 = vadd.f32 %v4279_v44, %v3951_v42  ;;  %v4281_v36 = vpop.f32.mrb[1].mxu0  ;;  %v3955_v48 = vpop.f32.mrb[2].mxu1 }
 0x32a   : > { %v5202_v47 = vadd.f32 %v4281_v36, %v3953_v46  ;;  %v4283_v50 = vpop.f32.mrb[2].mxu0  ;;  %v3956_v54 = vpop.f32.mrb[3].mxu1 }
 0x32b   : > { %v4284_v55 = vpop.f32.mrb[3].mxu0 }
 0x32c   : > { %v4288_v38 = vcombine.low %v5201_v25, %v5202_v47 }
 0x32e   : > { %v4295_v60 = vrot.slane %v4288_v38, %v4294_v16 }
 0x330   : > { %v4297_v1 = vadd.f32 %v4295_v60, %v321_v39 }
 0x332   : > { %4298 = vst [vmem:[#allocation2] sm:$0xf] %v4297_v1 }
 0x339   : > { %v4302_v24 = vld [vmem:[#allocation2] sm:$0xf] }
 0x33a   : > { %v4322_v4 = vadd.f32 %v4320_v3, %v4302_v24 }
 0x33c   : > { %v4323_v40 = vmax.f32 %v4322_v4, 0.0 }
 0x33e   : > { %v4331_v41 = vrot.slane %v4323_v40, %v4294_v16 }
 0x340   : > { %v4332_v58 = vcombine.high %v4331_v41, %v4331_v41  ;;  %v4335_v6 = vpack.c.bf16 %v4331_v41, %v4331_v41 }
 0x342   : > { %v4336_v43 = vpack.c.bf16 %v4332_v58, %v4332_v58 }
 0x344   : > { %4497 = vmatprep.mubr.bf16.mxu1 %v4336_v43 }
 0x345   : > { %4498 = vmatmul.mubr.bf16.vlgmr.msra.gmra.mrb[4].mxu1 %v4335_v6 }
 0x418   : > { %v5195_v59 = vpop.f32.mrb[4].mxu1 }
 0x419   : > { %v5196_v7 = vpop.f32.mrb[5].mxu1 }
 0x41a   : > { %v5197_v8 = vadd.f32 %v5196_v7, %v5195_v59  ;;  %v5198_v9 = vpop.f32.mrb[6].mxu1 }
 0x41b   : > { %v5199_v10 = vpop.f32.mrb[7].mxu1 }
 0x41c   : > { %4506 = vst.msk [vmem:[%s314_s11] sm:$0x3] %vm4505_vm0, %v5197_v8 }
 0x41d PF: > { %s20_s20 = sadd.s32 1, %s6227_s20   ;;  %s7144_s15 = smov %s6211_s16 }
 0x41e   : > { %p17_p4 = scmp.ge.s32.totalorder %s20_s20, 4   ;;  %s7145_s16 = smov %s6215_s17 }
 0x41f   : > { %s7146_s17 = smov %s6311_s27  ;;  %s7147_s18 = smov %s6223_s19 }
 0x420   : > { %s7148_s19 = smov %s7150_s22  ;;  %19 = sbr.rel (!%p17_p4) target bundleno = 6 (0x6), region = 103 }
 0x427   :  { %4526 = vsyncpa [#allocation4], 1 }
 0x428   :  { %4528 = vsyncpa [#allocation4 + $0x1], 1 }
 0x429   :  { %4529 = vsyncpa [#allocation6], 1 }
 0x42a   :  { %4531 = vsyncpa [#allocation6 + $0x1], 1 }

</bundles_post_ra>
